<compile_context>
chip_gen: v6e
topology: v6e:2x2x1
jax: 0.10.0
libtpu: 0.0.40
codegen_flags: <defaults>
</compile_context>

<pallas_src>
import jax
import jax.numpy as jnp
from jax.experimental import pallas as pl
from jax.experimental.pallas import tpu as pltpu


# --------------------------- Pallas kernel ---------------------------
def _bigru_kernel(xp_ref, wih_ref, whh_ref, bih_ref, bhn_ref, h0_ref, out_ref):
    """Fused bidirectional GRU (PyTorch gate order r, z, n), both directions per step.

    Packed layouts (Hp = lane-padded hidden size, multiple of 64; gate columns
    [ r_f r_b | z_f z_b | n_f n_b ], each sub-block Hp wide => every slice below is
    128-lane aligned):
      xp_ref  : (T*Bp, 2E)   row t*Bp+b holds [x[t,b] | x[T-1-t,b]]
      wih_ref : (2E, 6Hp)    rows 0:E feed forward columns, rows E:2E feed backward cols
      whh_ref : (2Hp, 6Hp)   block-diagonal: rows 0:Hp act on h_f, rows Hp:2Hp on h_b
      bih_ref : (1, 6Hp)     b_ih (+ folded b_hh for the r/z gates)
      bhn_ref : (1, 2Hp)     hidden bias of the n gate [b_hn_f | b_hn_b]
      h0_ref  : (Bp, 2Hp)    [h0_f | h0_b]
      out_ref : (T, Bp, 2Hp) packed per-step hidden state (fwd at step time i,
                             bwd at step i holds real time T-1-i; wrapper flips/splits)
    """
    T, Bp, H2 = out_ref.shape          # H2 = 2*Hp (multiple of 128)
    Hp2 = 2 * H2                       # 4*Hp: [r|z] vs [n] column split

    # Hoisted input projection: ONE MXU matmul covers every step and both directions.
    gi = jnp.dot(xp_ref[...], wih_ref[...],
                 preferred_element_type=jnp.float32) + bih_ref[...]      # (T*Bp, 6Hp) f32
    gi3 = gi.reshape(T, Bp, 3 * H2)    # Bp is a multiple of 8 -> tile-aligned reshape

    whh = whh_ref[...]
    mm_dtype = whh.dtype
    # Hoisted sublane broadcast of the n-gate hidden bias (JAX does not CSE broadcasts).
    bhn = jnp.broadcast_to(bhn_ref[...], (Bp, H2))

    h = h0_ref[...]                    # (Bp, 2Hp) f32, [h_f | h_b]

    # T is small & static -> full unroll with static indices (scheduler visibility).
    for i in range(T):
        gi_t = gi3[i]                                                    # (Bp, 6Hp)
        # One block-diagonal matmul gives both directions' hidden-gate terms.
        gh = jnp.dot(h.astype(mm_dtype), whh,
                     preferred_element_type=jnp.float32)                 # (Bp, 6Hp)
        rz = jax.nn.sigmoid(gi_t[:, :Hp2] + gh[:, :Hp2])                 # [r_f r_b z_f z_b]
        r = rz[:, :H2]
        z = rz[:, H2:]
        n = jnp.tanh(gi_t[:, Hp2:] + r * (gh[:, Hp2:] + bhn))            # [n_f | n_b]
        h = n + z * (h - n)                                              # == (1-z)*n + z*h
        out_ref[i] = h                 # lane-dense (Bp, 2Hp) unmasked store


# --------------------------- parameter packing (one-time) ---------------------------
def pack_gru_params(params, matmul_dtype=jnp.bfloat16):
    """Pack PyTorch-named bidirectional-GRU params into the kernel's fused, aligned layout.

    Gate-column layout (6*Hp wide): [ r_f r_b | z_f z_b | n_f n_b ], each sub-block Hp
    wide; Hp is a multiple of 64 so all kernel slices are 128-lane aligned.  The hidden
    biases of the r and z gates are folded into the input bias (numerically identical);
    only the n-gate hidden bias stays separate.
    """
    H = params["weight_hh_l0"].shape[1]
    E = params["weight_ih_l0"].shape[1]
    Hp = -(-H // 64) * 64                              # 2*Hp is a multiple of 128

    wih = jnp.zeros((2 * E, 6 * Hp), jnp.float32)
    whh = jnp.zeros((2 * Hp, 6 * Hp), jnp.float32)
    bih = jnp.zeros((1, 6 * Hp), jnp.float32)
    bhn = jnp.zeros((1, 2 * Hp), jnp.float32)

    for rev, sfx in ((False, ""), (True, "_reverse")):
        w_ih = params["weight_ih_l0" + sfx]            # (3H, E)
        w_hh = params["weight_hh_l0" + sfx]            # (3H, H)
        b_ih = params["bias_ih_l0" + sfx]              # (3H,)
        b_hh = params["bias_hh_l0" + sfx]              # (3H,)
        row_x = E if rev else 0                        # x_pair rows: [x_t | x_{T-1-t}]
        row_h = Hp if rev else 0                       # packed h:    [h_f | h_b]
        for g in range(3):                             # PyTorch gate order: r, z, n
            c = g * 2 * Hp + (Hp if rev else 0)
            wih = wih.at[row_x:row_x + E, c:c + H].set(w_ih[g * H:(g + 1) * H, :].T)
            whh = whh.at[row_h:row_h + H, c:c + H].set(w_hh[g * H:(g + 1) * H, :].T)
            if g < 2:                                  # fold b_hh(r,z) into input bias
                bih = bih.at[0, c:c + H].set(b_ih[g * H:(g + 1) * H] + b_hh[g * H:(g + 1) * H])
            else:
                bih = bih.at[0, c:c + H].set(b_ih[g * H:(g + 1) * H])
                bhn = bhn.at[0, row_h:row_h + H].set(b_hh[g * H:(g + 1) * H])

    return {"wih": wih.astype(matmul_dtype), "whh": whh.astype(matmul_dtype),
            "bih": bih, "bhn": bhn, "H": H, "Hp": Hp, "E": E}


# --------------------------- wrapper ---------------------------
def bigru_encoder(x, packed, h0=None):
    """x: (T, B, E) float32. Returns (output (T,B,2H), h_n (2,B,H)) like torch.nn.GRU."""
    T, B, E = x.shape
    H, Hp = packed["H"], packed["Hp"]
    assert E == packed["E"]
    Bp = max(8, -(-B // 8) * 8)                        # sublane-aligned batch
    mm_dtype = packed["wih"].dtype

    # Wrapper-side layout plumbing (XLA): pair x[t] with x[T-1-t] so one hoisted kernel
    # matmul covers both directions with no per-step select inside the recurrence.
    x_pair = jnp.concatenate([x, x[::-1]], axis=-1)                      # (T, B, 2E)
    x_pair = jnp.pad(x_pair, ((0, 0), (0, Bp - B), (0, 0)))              # (T, Bp, 2E)
    xp2d = x_pair.reshape(T * Bp, 2 * E).astype(mm_dtype)

    h0_pack = jnp.zeros((Bp, 2 * Hp), jnp.float32)
    if h0 is not None:
        h0_pack = h0_pack.at[:B, 0:H].set(h0[0]).at[:B, Hp:Hp + H].set(h0[1])

    # VMEM budget (whole-sequence-in-VMEM design).
    mm_bytes = jnp.dtype(mm_dtype).itemsize
    approx_bytes = (xp2d.size * mm_bytes
                    + packed["wih"].size * mm_bytes + packed["whh"].size * mm_bytes
                    + (packed["bih"].size + packed["bhn"].size + h0_pack.size) * 4
                    + T * Bp * 2 * Hp * 4              # packed output
                    + T * Bp * 6 * Hp * 4)             # gi intermediate
    try:
        vmem_cap = pltpu.get_tpu_info().vmem_capacity_bytes
    except Exception:
        vmem_cap = 64 * 1024 * 1024                    # v7x per-core floor
    assert 2 * approx_bytes < vmem_cap, \
        "sequence too large for single-shot VMEM kernel"  # TODO(synk): T-chunked grid
    vmem_limit = int(min(0.75 * vmem_cap, max(16 * 1024 * 1024, 4 * approx_bytes)))

    flops = 2 * (T * Bp) * (2 * E) * (6 * Hp) + T * 2 * Bp * (2 * Hp) * (6 * Hp)
    transcendentals = T * Bp * 6 * Hp

    vmem = pl.BlockSpec(memory_space=pltpu.MemorySpace.VMEM)
    out_packed = pl.pallas_call(
        _bigru_kernel,
        out_shape=jax.ShapeDtypeStruct((T, Bp, 2 * Hp), jnp.float32),
        in_specs=[vmem] * 6,
        out_specs=vmem,
        compiler_params=pltpu.CompilerParams(vmem_limit_bytes=vmem_limit),
        cost_estimate=pl.CostEstimate(flops=flops, transcendentals=transcendentals,
                                      bytes_accessed=approx_bytes),
    )(xp2d, packed["wih"], packed["whh"], packed["bih"], packed["bhn"], h0_pack)

    # XLA-side flip/split (free layout plumbing): backward half at kernel step i is real
    # time T-1-i; the final packed h (step T-1) is exactly [h_n_fwd | h_n_bwd].
    out_fwd = out_packed[:, :B, 0:H]
    out_bwd = out_packed[::-1, :B, Hp:Hp + H]
    output = jnp.concatenate([out_fwd, out_bwd], axis=-1)               # (T, B, 2H)
    h_n = jnp.stack([out_packed[T - 1, :B, 0:H],
                     out_packed[T - 1, :B, Hp:Hp + H]], axis=0)          # (2, B, H)
    return output, h_n


# ----------------- pure-JAX reference (correctness check) -----------------
def _ref_gru_dir(x, wih, whh, bih, bhh, h0, reverse):
    T = x.shape[0]
    H = whh.shape[1]
    ts = range(T - 1, -1, -1) if reverse else range(T)
    h = h0
    outs = [None] * T
    for t in ts:
        gi = x[t] @ wih.T + bih
        gh = h @ whh.T + bhh
        r = jax.nn.sigmoid(gi[:, :H] + gh[:, :H])
        z = jax.nn.sigmoid(gi[:, H:2 * H] + gh[:, H:2 * H])
        n = jnp.tanh(gi[:, 2 * H:] + r * gh[:, 2 * H:])
        h = (1.0 - z) * n + z * h
        outs[t] = h
    return jnp.stack(outs, axis=0), h


def bigru_reference(x, params, h0):
    of, hf = _ref_gru_dir(x, params["weight_ih_l0"], params["weight_hh_l0"],
                          params["bias_ih_l0"], params["bias_hh_l0"], h0[0], False)
    ob, hb = _ref_gru_dir(x, params["weight_ih_l0_reverse"], params["weight_hh_l0_reverse"],
                          params["bias_ih_l0_reverse"], params["bias_hh_l0_reverse"], h0[1], True)
    return jnp.concatenate([of, ob], axis=-1), jnp.stack([hf, hb], axis=0)


def init_gru_params(key, embedding_dim, hidden_dim):
    """Deterministic init matching torch.nn.GRU: U(-1/sqrt(H), 1/sqrt(H))."""
    k = 1.0 / (hidden_dim ** 0.5)
    names_shapes = [
        ("weight_ih_l0", (3 * hidden_dim, embedding_dim)),
        ("weight_hh_l0", (3 * hidden_dim, hidden_dim)),
        ("bias_ih_l0", (3 * hidden_dim,)),
        ("bias_hh_l0", (3 * hidden_dim,)),
        ("weight_ih_l0_reverse", (3 * hidden_dim, embedding_dim)),
        ("weight_hh_l0_reverse", (3 * hidden_dim, hidden_dim)),
        ("bias_ih_l0_reverse", (3 * hidden_dim,)),
        ("bias_hh_l0_reverse", (3 * hidden_dim,)),
    ]
    keys = jax.random.split(key, len(names_shapes))
    return {
        name: jax.random.uniform(kk, shape, jnp.float32, minval=-k, maxval=k)
        for kk, (name, shape) in zip(keys, names_shapes)
    }


if __name__ == "__main__":
    T, B, E, H = 8, 4, 32, 32   # seq, batch, embedding_dim, hidden_dim
    key = jax.random.PRNGKey(0)
    k_x, k_p = jax.random.split(key)

    x = jax.random.normal(k_x, (T, B, E), jnp.float32)
    params = init_gru_params(k_p, E, H)
    h0 = jnp.zeros((2, B, H), jnp.float32)            # PyTorch: hidden=None -> zeros

    ref_out, ref_hn = bigru_reference(x, params, h0)

    # 1) exact-math path: f32 MXU operands (verifies packing / fold / flip semantics).
    packed_f32 = pack_gru_params(params, matmul_dtype=jnp.float32)
    out_f32, hn_f32 = bigru_encoder(x, packed_f32, h0)
    out_f32 = jax.block_until_ready(out_f32)
    hn_f32 = jax.block_until_ready(hn_f32)
    assert out_f32.shape == (T, B, 2 * H) and hn_f32.shape == (2, B, H)
    assert jnp.allclose(out_f32, ref_out, atol=1e-4, rtol=1e-4), \
        float(jnp.max(jnp.abs(out_f32 - ref_out)))
    assert jnp.allclose(hn_f32, ref_hn, atol=1e-4, rtol=1e-4), \
        float(jnp.max(jnp.abs(hn_f32 - ref_hn)))

    # 2) default perf path: bf16 MXU operands, f32 accumulation & f32 recurrence.
    packed_bf16 = pack_gru_params(params)             # matmul_dtype=bfloat16 (default)
    out_bf16, hn_bf16 = bigru_encoder(x, packed_bf16, h0)
    out_bf16 = jax.block_until_ready(out_bf16)
    hn_bf16 = jax.block_until_ready(hn_bf16)
    assert jnp.allclose(out_bf16, ref_out, atol=3e-2, rtol=3e-2), \
        float(jnp.max(jnp.abs(out_bf16 - ref_out)))
    assert jnp.allclose(hn_bf16, ref_hn, atol=3e-2, rtol=3e-2), \
        float(jnp.max(jnp.abs(hn_bf16 - ref_hn)))

    print("KERNEL_OK")
</pallas_src>

<mosaic_0001>
module attributes {stable_mosaic.version = 11 : i64} {
  func.func @_bigru_kernel(%arg0: memref<64x64xf32, #tpu.memory_space<vmem>>, %arg1: memref<64x384xf32, #tpu.memory_space<vmem>>, %arg2: memref<128x384xf32, #tpu.memory_space<vmem>>, %arg3: memref<1x384xf32, #tpu.memory_space<vmem>>, %arg4: memref<1x128xf32, #tpu.memory_space<vmem>>, %arg5: memref<8x128xf32, #tpu.memory_space<vmem>>, %arg6: memref<8x8x128xf32, #tpu.memory_space<vmem>>) attributes {dimension_semantics = [], scalar_prefetch = 0 : i64, scratch_operands = 0 : i64, tpu.core_type = #tpu.core_type<tc>} {
    %c0 = arith.constant 0 : index
    %c0_0 = arith.constant 0 : index
    %0 = vector.load %arg0[%c0, %c0_0] : memref<64x64xf32, #tpu.memory_space<vmem>>, vector<64x64xf32>
    %c0_1 = arith.constant 0 : index
    %c0_2 = arith.constant 0 : index
    %1 = vector.load %arg1[%c0_1, %c0_2] : memref<64x384xf32, #tpu.memory_space<vmem>>, vector<64x384xf32>
    %cst = arith.constant dense<0.000000e+00> : vector<64x384xf32>
    %2 = tpu.matmul %0, %1, %cst {dimension_numbers = #tpu.dot_dimension_numbers<[1], [0], [0], [1], [0, 0, 1, 1], [], []>} : vector<64x64xf32>, vector<64x384xf32>, vector<64x384xf32> -> vector<64x384xf32>
    %c0_3 = arith.constant 0 : index
    %c0_4 = arith.constant 0 : index
    %3 = vector.load %arg3[%c0_3, %c0_4] : memref<1x384xf32, #tpu.memory_space<vmem>>, vector<1x384xf32>
    %4 = vector.broadcast %3 : vector<1x384xf32> to vector<64x384xf32>
    %5 = arith.addf %2, %4 : vector<64x384xf32>
    %6 = vector.shape_cast %5 : vector<64x384xf32> to vector<8x8x384xf32>
    %c0_5 = arith.constant 0 : index
    %c0_6 = arith.constant 0 : index
    %7 = vector.load %arg2[%c0_5, %c0_6] : memref<128x384xf32, #tpu.memory_space<vmem>>, vector<128x384xf32>
    %c0_7 = arith.constant 0 : index
    %c0_8 = arith.constant 0 : index
    %8 = vector.load %arg4[%c0_7, %c0_8] : memref<1x128xf32, #tpu.memory_space<vmem>>, vector<1x128xf32>
    %9 = vector.shape_cast %8 : vector<1x128xf32> to vector<1x128xf32>
    %10 = vector.broadcast %9 : vector<1x128xf32> to vector<8x128xf32>
    %c0_9 = arith.constant 0 : index
    %c0_10 = arith.constant 0 : index
    %11 = vector.load %arg5[%c0_9, %c0_10] : memref<8x128xf32, #tpu.memory_space<vmem>>, vector<8x128xf32>
    %12 = vector.extract_strided_slice %6 {offsets = [0, 0, 0], sizes = [1, 8, 384], strides = [1, 1, 1]} : vector<8x8x384xf32> to vector<1x8x384xf32>
    %13 = vector.shape_cast %12 : vector<1x8x384xf32> to vector<8x384xf32>
    %cst_11 = arith.constant dense<0.000000e+00> : vector<8x384xf32>
    %14 = tpu.matmul %11, %7, %cst_11 {dimension_numbers = #tpu.dot_dimension_numbers<[1], [0], [0], [1], [0, 0, 1, 1], [], []>} : vector<8x128xf32>, vector<128x384xf32>, vector<8x384xf32> -> vector<8x384xf32>
    %15 = vector.extract_strided_slice %13 {offsets = [0, 0], sizes = [8, 256], strides = [1, 1]} : vector<8x384xf32> to vector<8x256xf32>
    %16 = vector.extract_strided_slice %14 {offsets = [0, 0], sizes = [8, 256], strides = [1, 1]} : vector<8x384xf32> to vector<8x256xf32>
    %17 = arith.addf %15, %16 : vector<8x256xf32>
    %18 = arith.negf %17 : vector<8x256xf32>
    %19 = math.exp %18 : vector<8x256xf32>
    %cst_12 = arith.constant 1.000000e+00 : f32
    %20 = vector.broadcast %cst_12 : f32 to vector<8x256xf32>
    %21 = arith.addf %20, %19 : vector<8x256xf32>
    %22 = arith.divf %20, %21 : vector<8x256xf32>
    %23 = vector.extract_strided_slice %22 {offsets = [0, 0], sizes = [8, 128], strides = [1, 1]} : vector<8x256xf32> to vector<8x128xf32>
    %24 = vector.extract_strided_slice %22 {offsets = [0, 128], sizes = [8, 128], strides = [1, 1]} : vector<8x256xf32> to vector<8x128xf32>
    %25 = vector.extract_strided_slice %13 {offsets = [0, 256], sizes = [8, 128], strides = [1, 1]} : vector<8x384xf32> to vector<8x128xf32>
    %26 = vector.extract_strided_slice %14 {offsets = [0, 256], sizes = [8, 128], strides = [1, 1]} : vector<8x384xf32> to vector<8x128xf32>
    %27 = arith.addf %26, %10 : vector<8x128xf32>
    %28 = arith.mulf %23, %27 : vector<8x128xf32>
    %29 = arith.addf %25, %28 : vector<8x128xf32>
    %30 = math.tanh %29 : vector<8x128xf32>
    %31 = arith.subf %11, %30 : vector<8x128xf32>
    %32 = arith.mulf %24, %31 : vector<8x128xf32>
    %33 = arith.addf %30, %32 : vector<8x128xf32>
    %c0_13 = arith.constant 0 : index
    %c0_14 = arith.constant 0 : index
    %c0_15 = arith.constant 0 : index
    %34 = vector.load %arg6[%c0_13, %c0_14, %c0_15] : memref<8x8x128xf32, #tpu.memory_space<vmem>>, vector<1x8x128xf32>
    %35 = vector.shape_cast %34 : vector<1x8x128xf32> to vector<8x128xf32>
    %36 = vector.shape_cast %33 : vector<8x128xf32> to vector<1x8x128xf32>
    tpu.vector_store %arg6[%c0_13, %c0_14, %c0_15], %36 {strides = array<i32>} : memref<8x8x128xf32, #tpu.memory_space<vmem>>, vector<1x8x128xf32>,
    %37 = vector.extract_strided_slice %6 {offsets = [1, 0, 0], sizes = [1, 8, 384], strides = [1, 1, 1]} : vector<8x8x384xf32> to vector<1x8x384xf32>
    %38 = vector.shape_cast %37 : vector<1x8x384xf32> to vector<8x384xf32>
    %cst_16 = arith.constant dense<0.000000e+00> : vector<8x384xf32>
    %39 = tpu.matmul %33, %7, %cst_16 {dimension_numbers = #tpu.dot_dimension_numbers<[1], [0], [0], [1], [0, 0, 1, 1], [], []>} : vector<8x128xf32>, vector<128x384xf32>, vector<8x384xf32> -> vector<8x384xf32>
    %40 = vector.extract_strided_slice %38 {offsets = [0, 0], sizes = [8, 256], strides = [1, 1]} : vector<8x384xf32> to vector<8x256xf32>
    %41 = vector.extract_strided_slice %39 {offsets = [0, 0], sizes = [8, 256], strides = [1, 1]} : vector<8x384xf32> to vector<8x256xf32>
    %42 = arith.addf %40, %41 : vector<8x256xf32>
    %43 = arith.negf %42 : vector<8x256xf32>
    %44 = math.exp %43 : vector<8x256xf32>
    %cst_17 = arith.constant 1.000000e+00 : f32
    %45 = vector.broadcast %cst_17 : f32 to vector<8x256xf32>
    %46 = arith.addf %45, %44 : vector<8x256xf32>
    %47 = arith.divf %45, %46 : vector<8x256xf32>
    %48 = vector.extract_strided_slice %47 {offsets = [0, 0], sizes = [8, 128], strides = [1, 1]} : vector<8x256xf32> to vector<8x128xf32>
    %49 = vector.extract_strided_slice %47 {offsets = [0, 128], sizes = [8, 128], strides = [1, 1]} : vector<8x256xf32> to vector<8x128xf32>
    %50 = vector.extract_strided_slice %38 {offsets = [0, 256], sizes = [8, 128], strides = [1, 1]} : vector<8x384xf32> to vector<8x128xf32>
    %51 = vector.extract_strided_slice %39 {offsets = [0, 256], sizes = [8, 128], strides = [1, 1]} : vector<8x384xf32> to vector<8x128xf32>
    %52 = arith.addf %51, %10 : vector<8x128xf32>
    %53 = arith.mulf %48, %52 : vector<8x128xf32>
    %54 = arith.addf %50, %53 : vector<8x128xf32>
    %55 = math.tanh %54 : vector<8x128xf32>
    %56 = arith.subf %33, %55 : vector<8x128xf32>
    %57 = arith.mulf %49, %56 : vector<8x128xf32>
    %58 = arith.addf %55, %57 : vector<8x128xf32>
    %c1 = arith.constant 1 : index
    %c0_18 = arith.constant 0 : index
    %c0_19 = arith.constant 0 : index
    %59 = vector.load %arg6[%c1, %c0_18, %c0_19] : memref<8x8x128xf32, #tpu.memory_space<vmem>>, vector<1x8x128xf32>
    %60 = vector.shape_cast %59 : vector<1x8x128xf32> to vector<8x128xf32>
    %61 = vector.shape_cast %58 : vector<8x128xf32> to vector<1x8x128xf32>
    tpu.vector_store %arg6[%c1, %c0_18, %c0_19], %61 {strides = array<i32>} : memref<8x8x128xf32, #tpu.memory_space<vmem>>, vector<1x8x128xf32>,
    %62 = vector.extract_strided_slice %6 {offsets = [2, 0, 0], sizes = [1, 8, 384], strides = [1, 1, 1]} : vector<8x8x384xf32> to vector<1x8x384xf32>
    %63 = vector.shape_cast %62 : vector<1x8x384xf32> to vector<8x384xf32>
    %cst_20 = arith.constant dense<0.000000e+00> : vector<8x384xf32>
    %64 = tpu.matmul %58, %7, %cst_20 {dimension_numbers = #tpu.dot_dimension_numbers<[1], [0], [0], [1], [0, 0, 1, 1], [], []>} : vector<8x128xf32>, vector<128x384xf32>, vector<8x384xf32> -> vector<8x384xf32>
    %65 = vector.extract_strided_slice %63 {offsets = [0, 0], sizes = [8, 256], strides = [1, 1]} : vector<8x384xf32> to vector<8x256xf32>
    %66 = vector.extract_strided_slice %64 {offsets = [0, 0], sizes = [8, 256], strides = [1, 1]} : vector<8x384xf32> to vector<8x256xf32>
    %67 = arith.addf %65, %66 : vector<8x256xf32>
    %68 = arith.negf %67 : vector<8x256xf32>
    %69 = math.exp %68 : vector<8x256xf32>
    %cst_21 = arith.constant 1.000000e+00 : f32
    %70 = vector.broadcast %cst_21 : f32 to vector<8x256xf32>
    %71 = arith.addf %70, %69 : vector<8x256xf32>
    %72 = arith.divf %70, %71 : vector<8x256xf32>
    %73 = vector.extract_strided_slice %72 {offsets = [0, 0], sizes = [8, 128], strides = [1, 1]} : vector<8x256xf32> to vector<8x128xf32>
    %74 = vector.extract_strided_slice %72 {offsets = [0, 128], sizes = [8, 128], strides = [1, 1]} : vector<8x256xf32> to vector<8x128xf32>
    %75 = vector.extract_strided_slice %63 {offsets = [0, 256], sizes = [8, 128], strides = [1, 1]} : vector<8x384xf32> to vector<8x128xf32>
    %76 = vector.extract_strided_slice %64 {offsets = [0, 256], sizes = [8, 128], strides = [1, 1]} : vector<8x384xf32> to vector<8x128xf32>
    %77 = arith.addf %76, %10 : vector<8x128xf32>
    %78 = arith.mulf %73, %77 : vector<8x128xf32>
    %79 = arith.addf %75, %78 : vector<8x128xf32>
    %80 = math.tanh %79 : vector<8x128xf32>
    %81 = arith.subf %58, %80 : vector<8x128xf32>
    %82 = arith.mulf %74, %81 : vector<8x128xf32>
    %83 = arith.addf %80, %82 : vector<8x128xf32>
    %c2 = arith.constant 2 : index
    %c0_22 = arith.constant 0 : index
    %c0_23 = arith.constant 0 : index
    %84 = vector.load %arg6[%c2, %c0_22, %c0_23] : memref<8x8x128xf32, #tpu.memory_space<vmem>>, vector<1x8x128xf32>
    %85 = vector.shape_cast %84 : vector<1x8x128xf32> to vector<8x128xf32>
    %86 = vector.shape_cast %83 : vector<8x128xf32> to vector<1x8x128xf32>
    tpu.vector_store %arg6[%c2, %c0_22, %c0_23], %86 {strides = array<i32>} : memref<8x8x128xf32, #tpu.memory_space<vmem>>, vector<1x8x128xf32>,
    %87 = vector.extract_strided_slice %6 {offsets = [3, 0, 0], sizes = [1, 8, 384], strides = [1, 1, 1]} : vector<8x8x384xf32> to vector<1x8x384xf32>
    %88 = vector.shape_cast %87 : vector<1x8x384xf32> to vector<8x384xf32>
    %cst_24 = arith.constant dense<0.000000e+00> : vector<8x384xf32>
    %89 = tpu.matmul %83, %7, %cst_24 {dimension_numbers = #tpu.dot_dimension_numbers<[1], [0], [0], [1], [0, 0, 1, 1], [], []>} : vector<8x128xf32>, vector<128x384xf32>, vector<8x384xf32> -> vector<8x384xf32>
    %90 = vector.extract_strided_slice %88 {offsets = [0, 0], sizes = [8, 256], strides = [1, 1]} : vector<8x384xf32> to vector<8x256xf32>
    %91 = vector.extract_strided_slice %89 {offsets = [0, 0], sizes = [8, 256], strides = [1, 1]} : vector<8x384xf32> to vector<8x256xf32>
    %92 = arith.addf %90, %91 : vector<8x256xf32>
    %93 = arith.negf %92 : vector<8x256xf32>
    %94 = math.exp %93 : vector<8x256xf32>
    %cst_25 = arith.constant 1.000000e+00 : f32
    %95 = vector.broadcast %cst_25 : f32 to vector<8x256xf32>
    %96 = arith.addf %95, %94 : vector<8x256xf32>
    %97 = arith.divf %95, %96 : vector<8x256xf32>
    %98 = vector.extract_strided_slice %97 {offsets = [0, 0], sizes = [8, 128], strides = [1, 1]} : vector<8x256xf32> to vector<8x128xf32>
    %99 = vector.extract_strided_slice %97 {offsets = [0, 128], sizes = [8, 128], strides = [1, 1]} : vector<8x256xf32> to vector<8x128xf32>
    %100 = vector.extract_strided_slice %88 {offsets = [0, 256], sizes = [8, 128], strides = [1, 1]} : vector<8x384xf32> to vector<8x128xf32>
    %101 = vector.extract_strided_slice %89 {offsets = [0, 256], sizes = [8, 128], strides = [1, 1]} : vector<8x384xf32> to vector<8x128xf32>
    %102 = arith.addf %101, %10 : vector<8x128xf32>
    %103 = arith.mulf %98, %102 : vector<8x128xf32>
    %104 = arith.addf %100, %103 : vector<8x128xf32>
    %105 = math.tanh %104 : vector<8x128xf32>
    %106 = arith.subf %83, %105 : vector<8x128xf32>
    %107 = arith.mulf %99, %106 : vector<8x128xf32>
    %108 = arith.addf %105, %107 : vector<8x128xf32>
    %c3 = arith.constant 3 : index
    %c0_26 = arith.constant 0 : index
    %c0_27 = arith.constant 0 : index
    %109 = vector.load %arg6[%c3, %c0_26, %c0_27] : memref<8x8x128xf32, #tpu.memory_space<vmem>>, vector<1x8x128xf32>
    %110 = vector.shape_cast %109 : vector<1x8x128xf32> to vector<8x128xf32>
    %111 = vector.shape_cast %108 : vector<8x128xf32> to vector<1x8x128xf32>
    tpu.vector_store %arg6[%c3, %c0_26, %c0_27], %111 {strides = array<i32>} : memref<8x8x128xf32, #tpu.memory_space<vmem>>, vector<1x8x128xf32>,
    %112 = vector.extract_strided_slice %6 {offsets = [4, 0, 0], sizes = [1, 8, 384], strides = [1, 1, 1]} : vector<8x8x384xf32> to vector<1x8x384xf32>
    %113 = vector.shape_cast %112 : vector<1x8x384xf32> to vector<8x384xf32>
    %cst_28 = arith.constant dense<0.000000e+00> : vector<8x384xf32>
    %114 = tpu.matmul %108, %7, %cst_28 {dimension_numbers = #tpu.dot_dimension_numbers<[1], [0], [0], [1], [0, 0, 1, 1], [], []>} : vector<8x128xf32>, vector<128x384xf32>, vector<8x384xf32> -> vector<8x384xf32>
    %115 = vector.extract_strided_slice %113 {offsets = [0, 0], sizes = [8, 256], strides = [1, 1]} : vector<8x384xf32> to vector<8x256xf32>
    %116 = vector.extract_strided_slice %114 {offsets = [0, 0], sizes = [8, 256], strides = [1, 1]} : vector<8x384xf32> to vector<8x256xf32>
    %117 = arith.addf %115, %116 : vector<8x256xf32>
    %118 = arith.negf %117 : vector<8x256xf32>
    %119 = math.exp %118 : vector<8x256xf32>
    %cst_29 = arith.constant 1.000000e+00 : f32
    %120 = vector.broadcast %cst_29 : f32 to vector<8x256xf32>
    %121 = arith.addf %120, %119 : vector<8x256xf32>
    %122 = arith.divf %120, %121 : vector<8x256xf32>
    %123 = vector.extract_strided_slice %122 {offsets = [0, 0], sizes = [8, 128], strides = [1, 1]} : vector<8x256xf32> to vector<8x128xf32>
    %124 = vector.extract_strided_slice %122 {offsets = [0, 128], sizes = [8, 128], strides = [1, 1]} : vector<8x256xf32> to vector<8x128xf32>
    %125 = vector.extract_strided_slice %113 {offsets = [0, 256], sizes = [8, 128], strides = [1, 1]} : vector<8x384xf32> to vector<8x128xf32>
    %126 = vector.extract_strided_slice %114 {offsets = [0, 256], sizes = [8, 128], strides = [1, 1]} : vector<8x384xf32> to vector<8x128xf32>
    %127 = arith.addf %126, %10 : vector<8x128xf32>
    %128 = arith.mulf %123, %127 : vector<8x128xf32>
    %129 = arith.addf %125, %128 : vector<8x128xf32>
    %130 = math.tanh %129 : vector<8x128xf32>
    %131 = arith.subf %108, %130 : vector<8x128xf32>
    %132 = arith.mulf %124, %131 : vector<8x128xf32>
    %133 = arith.addf %130, %132 : vector<8x128xf32>
    %c4 = arith.constant 4 : index
    %c0_30 = arith.constant 0 : index
    %c0_31 = arith.constant 0 : index
    %134 = vector.load %arg6[%c4, %c0_30, %c0_31] : memref<8x8x128xf32, #tpu.memory_space<vmem>>, vector<1x8x128xf32>
    %135 = vector.shape_cast %134 : vector<1x8x128xf32> to vector<8x128xf32>
    %136 = vector.shape_cast %133 : vector<8x128xf32> to vector<1x8x128xf32>
    tpu.vector_store %arg6[%c4, %c0_30, %c0_31], %136 {strides = array<i32>} : memref<8x8x128xf32, #tpu.memory_space<vmem>>, vector<1x8x128xf32>,
    %137 = vector.extract_strided_slice %6 {offsets = [5, 0, 0], sizes = [1, 8, 384], strides = [1, 1, 1]} : vector<8x8x384xf32> to vector<1x8x384xf32>
    %138 = vector.shape_cast %137 : vector<1x8x384xf32> to vector<8x384xf32>
    %cst_32 = arith.constant dense<0.000000e+00> : vector<8x384xf32>
    %139 = tpu.matmul %133, %7, %cst_32 {dimension_numbers = #tpu.dot_dimension_numbers<[1], [0], [0], [1], [0, 0, 1, 1], [], []>} : vector<8x128xf32>, vector<128x384xf32>, vector<8x384xf32> -> vector<8x384xf32>
    %140 = vector.extract_strided_slice %138 {offsets = [0, 0], sizes = [8, 256], strides = [1, 1]} : vector<8x384xf32> to vector<8x256xf32>
    %141 = vector.extract_strided_slice %139 {offsets = [0, 0], sizes = [8, 256], strides = [1, 1]} : vector<8x384xf32> to vector<8x256xf32>
    %142 = arith.addf %140, %141 : vector<8x256xf32>
    %143 = arith.negf %142 : vector<8x256xf32>
    %144 = math.exp %143 : vector<8x256xf32>
    %cst_33 = arith.constant 1.000000e+00 : f32
    %145 = vector.broadcast %cst_33 : f32 to vector<8x256xf32>
    %146 = arith.addf %145, %144 : vector<8x256xf32>
    %147 = arith.divf %145, %146 : vector<8x256xf32>
    %148 = vector.extract_strided_slice %147 {offsets = [0, 0], sizes = [8, 128], strides = [1, 1]} : vector<8x256xf32> to vector<8x128xf32>
    %149 = vector.extract_strided_slice %147 {offsets = [0, 128], sizes = [8, 128], strides = [1, 1]} : vector<8x256xf32> to vector<8x128xf32>
    %150 = vector.extract_strided_slice %138 {offsets = [0, 256], sizes = [8, 128], strides = [1, 1]} : vector<8x384xf32> to vector<8x128xf32>
    %151 = vector.extract_strided_slice %139 {offsets = [0, 256], sizes = [8, 128], strides = [1, 1]} : vector<8x384xf32> to vector<8x128xf32>
    %152 = arith.addf %151, %10 : vector<8x128xf32>
    %153 = arith.mulf %148, %152 : vector<8x128xf32>
    %154 = arith.addf %150, %153 : vector<8x128xf32>
    %155 = math.tanh %154 : vector<8x128xf32>
    %156 = arith.subf %133, %155 : vector<8x128xf32>
    %157 = arith.mulf %149, %156 : vector<8x128xf32>
    %158 = arith.addf %155, %157 : vector<8x128xf32>
    %c5 = arith.constant 5 : index
    %c0_34 = arith.constant 0 : index
    %c0_35 = arith.constant 0 : index
    %159 = vector.load %arg6[%c5, %c0_34, %c0_35] : memref<8x8x128xf32, #tpu.memory_space<vmem>>, vector<1x8x128xf32>
    %160 = vector.shape_cast %159 : vector<1x8x128xf32> to vector<8x128xf32>
    %161 = vector.shape_cast %158 : vector<8x128xf32> to vector<1x8x128xf32>
    tpu.vector_store %arg6[%c5, %c0_34, %c0_35], %161 {strides = array<i32>} : memref<8x8x128xf32, #tpu.memory_space<vmem>>, vector<1x8x128xf32>,
    %162 = vector.extract_strided_slice %6 {offsets = [6, 0, 0], sizes = [1, 8, 384], strides = [1, 1, 1]} : vector<8x8x384xf32> to vector<1x8x384xf32>
    %163 = vector.shape_cast %162 : vector<1x8x384xf32> to vector<8x384xf32>
    %cst_36 = arith.constant dense<0.000000e+00> : vector<8x384xf32>
    %164 = tpu.matmul %158, %7, %cst_36 {dimension_numbers = #tpu.dot_dimension_numbers<[1], [0], [0], [1], [0, 0, 1, 1], [], []>} : vector<8x128xf32>, vector<128x384xf32>, vector<8x384xf32> -> vector<8x384xf32>
    %165 = vector.extract_strided_slice %163 {offsets = [0, 0], sizes = [8, 256], strides = [1, 1]} : vector<8x384xf32> to vector<8x256xf32>
    %166 = vector.extract_strided_slice %164 {offsets = [0, 0], sizes = [8, 256], strides = [1, 1]} : vector<8x384xf32> to vector<8x256xf32>
    %167 = arith.addf %165, %166 : vector<8x256xf32>
    %168 = arith.negf %167 : vector<8x256xf32>
    %169 = math.exp %168 : vector<8x256xf32>
    %cst_37 = arith.constant 1.000000e+00 : f32
    %170 = vector.broadcast %cst_37 : f32 to vector<8x256xf32>
    %171 = arith.addf %170, %169 : vector<8x256xf32>
    %172 = arith.divf %170, %171 : vector<8x256xf32>
    %173 = vector.extract_strided_slice %172 {offsets = [0, 0], sizes = [8, 128], strides = [1, 1]} : vector<8x256xf32> to vector<8x128xf32>
    %174 = vector.extract_strided_slice %172 {offsets = [0, 128], sizes = [8, 128], strides = [1, 1]} : vector<8x256xf32> to vector<8x128xf32>
    %175 = vector.extract_strided_slice %163 {offsets = [0, 256], sizes = [8, 128], strides = [1, 1]} : vector<8x384xf32> to vector<8x128xf32>
    %176 = vector.extract_strided_slice %164 {offsets = [0, 256], sizes = [8, 128], strides = [1, 1]} : vector<8x384xf32> to vector<8x128xf32>
    %177 = arith.addf %176, %10 : vector<8x128xf32>
    %178 = arith.mulf %173, %177 : vector<8x128xf32>
    %179 = arith.addf %175, %178 : vector<8x128xf32>
    %180 = math.tanh %179 : vector<8x128xf32>
    %181 = arith.subf %158, %180 : vector<8x128xf32>
    %182 = arith.mulf %174, %181 : vector<8x128xf32>
    %183 = arith.addf %180, %182 : vector<8x128xf32>
    %c6 = arith.constant 6 : index
    %c0_38 = arith.constant 0 : index
    %c0_39 = arith.constant 0 : index
    %184 = vector.load %arg6[%c6, %c0_38, %c0_39] : memref<8x8x128xf32, #tpu.memory_space<vmem>>, vector<1x8x128xf32>
    %185 = vector.shape_cast %184 : vector<1x8x128xf32> to vector<8x128xf32>
    %186 = vector.shape_cast %183 : vector<8x128xf32> to vector<1x8x128xf32>
    tpu.vector_store %arg6[%c6, %c0_38, %c0_39], %186 {strides = array<i32>} : memref<8x8x128xf32, #tpu.memory_space<vmem>>, vector<1x8x128xf32>,
    %187 = vector.extract_strided_slice %6 {offsets = [7, 0, 0], sizes = [1, 8, 384], strides = [1, 1, 1]} : vector<8x8x384xf32> to vector<1x8x384xf32>
    %188 = vector.shape_cast %187 : vector<1x8x384xf32> to vector<8x384xf32>
    %cst_40 = arith.constant dense<0.000000e+00> : vector<8x384xf32>
    %189 = tpu.matmul %183, %7, %cst_40 {dimension_numbers = #tpu.dot_dimension_numbers<[1], [0], [0], [1], [0, 0, 1, 1], [], []>} : vector<8x128xf32>, vector<128x384xf32>, vector<8x384xf32> -> vector<8x384xf32>
    %190 = vector.extract_strided_slice %188 {offsets = [0, 0], sizes = [8, 256], strides = [1, 1]} : vector<8x384xf32> to vector<8x256xf32>
    %191 = vector.extract_strided_slice %189 {offsets = [0, 0], sizes = [8, 256], strides = [1, 1]} : vector<8x384xf32> to vector<8x256xf32>
    %192 = arith.addf %190, %191 : vector<8x256xf32>
    %193 = arith.negf %192 : vector<8x256xf32>
    %194 = math.exp %193 : vector<8x256xf32>
    %cst_41 = arith.constant 1.000000e+00 : f32
    %195 = vector.broadcast %cst_41 : f32 to vector<8x256xf32>
    %196 = arith.addf %195, %194 : vector<8x256xf32>
    %197 = arith.divf %195, %196 : vector<8x256xf32>
    %198 = vector.extract_strided_slice %197 {offsets = [0, 0], sizes = [8, 128], strides = [1, 1]} : vector<8x256xf32> to vector<8x128xf32>
    %199 = vector.extract_strided_slice %197 {offsets = [0, 128], sizes = [8, 128], strides = [1, 1]} : vector<8x256xf32> to vector<8x128xf32>
    %200 = vector.extract_strided_slice %188 {offsets = [0, 256], sizes = [8, 128], strides = [1, 1]} : vector<8x384xf32> to vector<8x128xf32>
    %201 = vector.extract_strided_slice %189 {offsets = [0, 256], sizes = [8, 128], strides = [1, 1]} : vector<8x384xf32> to vector<8x128xf32>
    %202 = arith.addf %201, %10 : vector<8x128xf32>
    %203 = arith.mulf %198, %202 : vector<8x128xf32>
    %204 = arith.addf %200, %203 : vector<8x128xf32>
    %205 = math.tanh %204 : vector<8x128xf32>
    %206 = arith.subf %183, %205 : vector<8x128xf32>
    %207 = arith.mulf %199, %206 : vector<8x128xf32>
    %208 = arith.addf %205, %207 : vector<8x128xf32>
    %c7 = arith.constant 7 : index
    %c0_42 = arith.constant 0 : index
    %c0_43 = arith.constant 0 : index
    %209 = vector.load %arg6[%c7, %c0_42, %c0_43] : memref<8x8x128xf32, #tpu.memory_space<vmem>>, vector<1x8x128xf32>
    %210 = vector.shape_cast %209 : vector<1x8x128xf32> to vector<8x128xf32>
    %211 = vector.shape_cast %208 : vector<8x128xf32> to vector<1x8x128xf32>
    tpu.vector_store %arg6[%c7, %c0_42, %c0_43], %211 {strides = array<i32>} : memref<8x8x128xf32, #tpu.memory_space<vmem>>, vector<1x8x128xf32>,
    return
  }
}

</mosaic_0001>

<bundles_post_ra>
// kernel: tpu_custom_call.1
= control target key start
LH: loop header
LB: loop body
LE: loop exit
PB: predicated region body
PF: predicated region fallthrough
CT: control target
= control target key end

     0   :  { %11 = vsyncpa [#allocation3], 0  ;;  %s3462_s0 = inlined_call_operand.hbm [shape: f32[64,64], index: 0, kind: input, shape index: {}]   ;;  %s3463_s1 = inlined_call_operand.hbm [shape: f32[64,384], index: 1, kind: input, shape index: {}]   ;;  %s3464_s2 = inlined_call_operand.hbm [shape: f32[128,384], index: 2, kind: input, shape index: {}]   ;;  %s3465_s3 = inlined_call_operand.hbm [shape: f32[1,384], index: 3, kind: input, shape index: {}]   ;;  %s3466_s4 = inlined_call_operand.vmem [shape: f32[1,128], index: 4, kind: input, shape index: {}]   ;;  %s3467_s5 = inlined_call_operand.vmem [shape: f32[8,128], index: 5, kind: input, shape index: {}]   ;;  %s3468_s6 = inlined_call_operand.hbm [shape: f32[8,8,128], index: 6, kind: output, shape index: {}]  }
   0x1   :  { %12 = vsyncpa [#allocation6], 0 }
   0x2   :  { %13 = vsyncpa [#allocation9], 0 }
   0x3   :  { %14 = vsyncpa [#allocation4], 0  ;;  %s2496_s21 = smov [#allocation5]  }
   0x4   :  { %s32_s22 = sshll.u32 %s2496_s21, 4  ;;  %s33_s22 = int_to_ptr.vmem [resolvable:$true] %s32_s22 }
   0x5   :  { %s2396_s23 = scalar_lea.vmem %s33_s22, 3072  ;;  %p2401_p1 = scmp.lt.s32.totalorder %s33_s22, %s33_s22 }
   0x6   :  { %p2397_p0 = scmp.ne.s32.totalorder %s33_s22, %s2396_s23  ;;  %p2402_p2 = scmp.lt.s32.totalorder %s2396_s23, %s2396_s23 }
   0x8   :  { %p2403_p3 = por %p2402_p2, %p2401_p1 }
   0xa   :  { %p2404_p4 = pnand %p2403_p3, %p2397_p0 }
   0xc   :  { %2407 = shalt.err (!%p2404_p4)
}
   0xd   :  { %s2497_s24 = smov 384   ;;  %s2498_s25 = smov 24  }
   0xe   :  { %38 = dma.hbm_to_vmem [thread:$0]  %s3463_s1, 3072, %s33_s22, [#allocation6], %s2497_s24, %s2497_s24, %s2498_s25  }
   0xf   :  { %s2499_s28 = smov [#allocation2]  }
  0x10   :  { %s20_s29 = sshll.u32 %s2499_s28, 4  ;;  %s21_s29 = int_to_ptr.vmem [resolvable:$true] %s20_s29 }
  0x11   :  { %s2416_s30 = scalar_lea.vmem %s21_s29, 1024  ;;  %p2421_p6 = scmp.lt.s32.totalorder %s21_s29, %s21_s29 }
  0x12   :  { %p2417_p5 = scmp.ne.s32.totalorder %s21_s29, %s2416_s30  ;;  %p2422_p7 = scmp.lt.s32.totalorder %s2416_s30, %s2416_s30 }
  0x14   :  { %p2423_p8 = por %p2422_p7, %p2421_p6 }
  0x16   :  { %p2424_p9 = pnand %p2423_p8, %p2417_p5 }
  0x18   :  { %2427 = shalt.err (!%p2424_p9)
}
  0x19   :  { %s2500_s7 = smov 128   ;;  %s2501_s8 = smov 8  }
  0x1a   :  { %26 = dma.hbm_to_vmem [thread:$0]  %s3462_s0, 1024, %s21_s29, [#allocation3], %s2500_s7, %s2500_s7, %s2501_s8  }
  0x1b   :  { %s2502_s1 = smov [#allocation7]   ;;  %s2503_s12 = smov [#allocation8]  }
  0x1c   :  { %s44_s11 = sshll.u32 %s2502_s1, 4  ;;  %s57_s13 = sshll.u32 %s2503_s12, 4  ;;  %s45_s11 = int_to_ptr.vmem [resolvable:$true] %s44_s11  ;;  %s58_s13 = int_to_ptr.vmem [resolvable:$true] %s57_s13 }
  0x1d   :  { %s2436_s14 = scalar_lea.vmem %s45_s11, 6144  ;;  %p2441_p11 = scmp.lt.s32.totalorder %s45_s11, %s45_s11 }
  0x1e   :  { %p2437_p10 = scmp.ne.s32.totalorder %s45_s11, %s2436_s14  ;;  %p2442_p12 = scmp.lt.s32.totalorder %s2436_s14, %s2436_s14 }
  0x20   :  { %p2443_p13 = por %p2442_p12, %p2441_p11 }
  0x22   :  { %p2444_p0 = pnand %p2443_p13, %p2437_p10 }
  0x24   :  { %2447 = shalt.err (!%p2444_p0)
}
  0x25   :  { %50 = dma.hbm_to_vmem [thread:$0]  %s3464_s2, 6144, %s45_s11, [#allocation6], %s2497_s24, %s2497_s24, %s2498_s25  }
  0x26   :  { %s2456_s0 = scalar_lea.vmem %s58_s13, 48  ;;  %s2460_s17 = scalar_lea.vmem %s58_s13, 64 }
  0x27   :  { %p2457_p1 = scmp.ne.s32.totalorder %s58_s13, %s2456_s0  ;;  %p2461_p2 = scmp.lt.s32.totalorder %s58_s13, %s58_s13 }
  0x28   :  { %p2462_p3 = scmp.lt.s32.totalorder %s2460_s17, %s2456_s0 }
  0x2a   :  { %p2463_p4 = por %p2462_p3, %p2461_p2 }
  0x2c   :  { %p2464_p5 = pnand %p2463_p4, %p2457_p1 }
  0x2e   :  { %2467 = shalt.err (!%p2464_p5)
}
  0x2f   :  { %60 = dma.hbm_to_vmem [thread:$0]  %s3465_s3, 48, %s58_s13, [#allocation9]  }
  0x30   :  { %2488 = dma.done.wait [#allocation3], 1024  }
  0x31   :  { %2489 = vsyncadd [#allocation3], 4294966272 }
  0x32   :  { %2490 = dma.done.wait [#allocation6], 9216  }
  0x33   :  { %2491 = vsyncadd [#allocation6], 4294958080 }
  0x34   :  { %2492 = dma.done.wait [#allocation9], 48  }
  0x35   :  { %2493 = vsyncadd [#allocation9], 4294967248  ;;  %v3473_v0 = vmov 0.0   ;;  %v107_v1 = vld [vmem:[#allocation5 + $0xb0] sm:$0xff]  ;;  %v106_v2 = vld [vmem:[#allocation5 + $0xa8] sm:$0xff]  ;;  %vm126_vm0 = vcmask 523264  }
  0x36   :  { %215 = vmatprep.mubr.f32.mxu0 %v3473_v0  ;;  %v104_v3 = vld [vmem:[#allocation5 + $0x98] sm:$0xff]  ;;  %167 = vmatprep.subr.mxu0 %v107_v1  ;;  %v103_v4 = vld [vmem:[#allocation5 + $0x90] sm:$0xff]  ;;  %v101_v5 = vld [vmem:[#allocation5 + $0x80] sm:$0xff]  ;;  %vm2505_vm1 = vmmov 0  }
  0x37   :  { %168 = vmatpush1.msra.mxu0 %v106_v2  ;;  %v100_v6 = vld [vmem:[#allocation5 + $0x78] sm:$0xff]  ;;  %v98_v7 = vld [vmem:[#allocation5 + $0x68] sm:$0xff]  ;;  %v97_v8 = vld [vmem:[#allocation5 + $0x60] sm:$0xff] }
  0x38   :  { %169 = vmatprep.subr.mxu0 %v104_v3  ;;  %v77_v9 = vld [vmem:[#allocation2] sm:$0xff]  ;;  %v95_v10 = vld [vmem:[#allocation5 + $0x50] sm:$0xff]  ;;  %v94_v11 = vld [vmem:[#allocation5 + $0x48] sm:$0xff] }
  0x39   :  { %170 = vmatpush1.msra.mxu0 %v103_v4  ;;  %1956 = vmatprep.mubr.msk.f32.mxu1 %vm126_vm0, %v77_v9  ;;  %v92_v12 = vld [vmem:[#allocation5 + $0x38] sm:$0xff]  ;;  %v91_v13 = vld [vmem:[#allocation5 + $0x30] sm:$0xff]  ;;  %v89_v14 = vld [vmem:[#allocation5 + $0x20] sm:$0xff] }
  0x3a   :  { %171 = vmatprep.subr.mxu0 %v101_v5  ;;  %v88_v15 = vld [vmem:[#allocation5 + $0x18] sm:$0xff]  ;;  %v86_v17 = vld [vmem:[#allocation5 + $0x8] sm:$0xff]  ;;  %v85_v18 = vld [vmem:[#allocation5] sm:$0xff] }
  0x3b   :  { %172 = vmatpush1.msra.mxu0 %v100_v6  ;;  %v108_v16 = vld [vmem:[#allocation5 + $0xb8] sm:$0xff]  ;;  %v105_v19 = vld [vmem:[#allocation5 + $0xa0] sm:$0xff]  ;;  %v2565_v20 = vld [vmem:[#allocation7 + $0x170] sm:$0xff] }
  0x3c   :  { %173 = vmatprep.subr.mxu0 %v98_v7  ;;  %1940 = vmatprep.subr.mxu1 %v108_v16  ;;  %3488 = vst [vmem:[#allocation15_spill] sm:$0xff] %v2565_v20  ;;  %v102_v21 = vld [vmem:[#allocation5 + $0x88] sm:$0xff]  ;;  %v2569_v23 = vld [vmem:[#allocation7 + $0x158] sm:$0xff]  ;;  %v2573_v24 = vld [vmem:[#allocation7 + $0x150] sm:$0xff] }
  0x3d   :  { %174 = vmatpush1.msra.mxu0 %v97_v8  ;;  %1941 = vmatpush3.msra.mxu1 %v108_v16  ;;  %v2567_v22 = vld [vmem:[#allocation7 + $0x168] sm:$0xff]  ;;  %v99_v25 = vld [vmem:[#allocation5 + $0x70] sm:$0xff]  ;;  %v2579_v27 = vld [vmem:[#allocation7 + $0x140] sm:$0xff] }
  0x3e   :  { %175 = vmatprep.subr.mxu0 %v95_v10  ;;  %1942 = vmatprep.subr.mxu1 %v105_v19  ;;  %v2577_v26 = vld [vmem:[#allocation2 + $0x8] sm:$0xff]  ;;  %v2582_v28 = vld [vmem:[#allocation7 + $0x138] sm:$0xff]  ;;  %v2590_v30 = vld [vmem:[#allocation7 + $0x120] sm:$0xff] }
  0x3f   :  { %176 = vmatpush1.msra.mxu0 %v94_v11  ;;  %1943 = vmatpush3.msra.mxu1 %v105_v19  ;;  %v2585_v29 = vld [vmem:[#allocation7 + $0x128] sm:$0xff]  ;;  %v96_v31 = vld [vmem:[#allocation5 + $0x58] sm:$0xff]  ;;  %v2594_v32 = vld [vmem:[#allocation2 + $0x10] sm:$0xff]  ;;  %v111_v19 = vlaneseq }
  0x40   :  { %177 = vmatprep.subr.mxu0 %v92_v12  ;;  %1944 = vmatprep.subr.mxu1 %v102_v21  ;;  %v2596_v33 = vld [vmem:[#allocation7 + $0x110] sm:$0xff]  ;;  %v2599_v34 = vld [vmem:[#allocation7 + $0x108] sm:$0xff]  ;;  %v2602_v35 = vld [vmem:[#allocation7 + $0xf8] sm:$0xff] }
  0x41   :  { %178 = vmatpush1.msra.mxu0 %v91_v13  ;;  %1945 = vmatpush3.msra.mxu1 %v102_v21  ;;  %v2607_v36 = vld [vmem:[#allocation7 + $0xf0] sm:$0xff]  ;;  %v93_v37 = vld [vmem:[#allocation5 + $0x40] sm:$0xff]  ;;  %v2611_v38 = vld [vmem:[#allocation2 + $0x18] sm:$0xff]  ;;  %v112_v21 = vshrl.u32 %v111_v19, 7 }
  0x42   :  { %179 = vmatprep.subr.mxu0 %v89_v14  ;;  %1946 = vmatprep.subr.mxu1 %v99_v25  ;;  %v2613_v39 = vld [vmem:[#allocation7 + $0xe0] sm:$0xff]  ;;  %v2616_v40 = vld [vmem:[#allocation7 + $0xd8] sm:$0xff]  ;;  %v2619_v41 = vld [vmem:[#allocation7 + $0xc8] sm:$0xff] }
  0x43   :  { %180 = vmatpush1.msra.mxu0 %v88_v15  ;;  %1947 = vmatpush3.msra.mxu1 %v99_v25  ;;  %v2624_v42 = vld [vmem:[#allocation7 + $0xc0] sm:$0xff]  ;;  %v90_v43 = vld [vmem:[#allocation5 + $0x28] sm:$0xff]  ;;  %v2630_v45 = vld [vmem:[#allocation7 + $0xb0] sm:$0xff]  ;;  %v113_v25 = vsub.s32 0, %v112_v21 }
  0x44   :  { %181 = vmatprep.subr.mxu0 %v86_v17  ;;  %1948 = vmatprep.subr.mxu1 %v96_v31  ;;  %v2628_v44 = vld [vmem:[#allocation2 + $0x20] sm:$0xff]  ;;  %v2633_v46 = vld [vmem:[#allocation7 + $0xa8] sm:$0xff]  ;;  %v2636_v47 = vld [vmem:[#allocation7 + $0x98] sm:$0xff] }
  0x45   :  { %182 = vmatpush1.msra.mxu0 %v85_v18  ;;  %1949 = vmatpush3.msra.mxu1 %v96_v31  ;;  %v2641_v48 = vld [vmem:[#allocation7 + $0x90] sm:$0xff]  ;;  %v2645_v50 = vld [vmem:[#allocation2 + $0x28] sm:$0xff]  ;;  %v2647_v51 = vld [vmem:[#allocation7 + $0x80] sm:$0xff] }
  0x46   :  { %1755 = vmatmul.mubr.msk.f32.vlgmr.msra.gmra.mxu0 %vm126_vm0, %v77_v9  ;;  %425 = vmatprep.subr.mxu0 %v2565_v20  ;;  %v87_v49 = vld [vmem:[#allocation5 + $0x10] sm:$0xff]  ;;  %v2650_v52 = vld [vmem:[#allocation7 + $0x78] sm:$0xff]  ;;  %v2653_v53 = vld [vmem:[#allocation7 + $0x68] sm:$0xff] }
  0x47   :  { %426 = vmatpush1.msra.mxu0 %v2567_v22  ;;  %221 = vmatprep.mubr.f32.mxu0 %v3473_v0  ;;  %v2658_v54 = vld [vmem:[#allocation7 + $0x60] sm:$0xff]  ;;  %v83_v55 = vld [vmem:[#allocation2 + $0x30] sm:$0xff]  ;;  %v2665_v57 = vld [vmem:[#allocation7 + $0x48] sm:$0xff] }
  0x48   :  { %427 = vmatprep.subr.mxu0 %v2569_v23  ;;  %1950 = vmatprep.subr.mxu1 %v93_v37  ;;  %v2662_v56 = vld [vmem:[#allocation7 + $0x50] sm:$0xff]  ;;  %v2668_v58 = vld [vmem:[#allocation7 + $0x38] sm:$0xff]  ;;  %v2679_v62 = vld [vmem:[#allocation7 + $0x20] sm:$0xff] }
  0x49   :  { %428 = vmatpush1.msra.mxu0 %v2573_v24  ;;  %1951 = vmatpush3.msra.mxu1 %v93_v37  ;;  %v2673_v59 = vld [vmem:[#allocation7 + $0x30] sm:$0xff]  ;;  %v2675_v60 = vld [vmem:[#allocation7 + $0x178] sm:$0xff]  ;;  %v2687_v1 = vld [vmem:[#allocation7 + $0x8] sm:$0xff] }
  0x4a   :  { %1756 = vmatmul.mubr.msk.f32.gmra.mxu0 %vm126_vm0, %v2577_v26  ;;  %429 = vmatprep.subr.mxu0 %v2579_v27  ;;  %v84_v61 = vld [vmem:[#allocation2 + $0x38] sm:$0xff]  ;;  %3490 = vst [vmem:[#allocation17_spill] sm:$0xff] %v2687_v1  ;;  %v2692_v2 = vld [vmem:[#allocation7] sm:$0xff]  ;;  %v2705_v5 = vld [vmem:[#allocation7 + $0x148] sm:$0xff] }
  0x4b   :  { %430 = vmatpush1.msra.mxu0 %v2582_v28  ;;  %227 = vmatprep.mubr.f32.mxu0 %v3473_v0  ;;  %v2682_v63 = vld [vmem:[#allocation7 + $0x18] sm:$0xff]  ;;  %3491 = vst [vmem:[#allocation18_spill] sm:$0xff] %v2692_v2  ;;  %v2694_v3 = vld [vmem:[#allocation7 + $0x160] sm:$0xff]  ;;  %v2711_v6 = vld [vmem:[#allocation7 + $0x130] sm:$0xff] }
  0x4c   :  { %431 = vmatprep.subr.mxu0 %v2585_v29  ;;  %1952 = vmatprep.subr.mxu1 %v90_v43  ;;  %3489 = vst [vmem:[#allocation16_spill] sm:$0xff] %v2682_v63  ;;  %v2701_v4 = vld [vmem:[%s3467_s5] sm:$0xff]  ;;  %v2717_v7 = vld [vmem:[#allocation7 + $0x118] sm:$0xff]  ;;  %v2731_v9 = vld [vmem:[#allocation7 + $0xe8] sm:$0xff] }
  0x4d   :  { %432 = vmatpush1.msra.mxu0 %v2590_v30  ;;  %1953 = vmatpush3.msra.mxu1 %v90_v43  ;;  %v2725_v8 = vld [vmem:[#allocation7 + $0x100] sm:$0xff]  ;;  %v2738_v10 = vld [vmem:[#allocation7 + $0xd0] sm:$0xff]  ;;  %v2744_v11 = vld [vmem:[#allocation7 + $0xb8] sm:$0xff] }
  0x4e   :  { %1757 = vmatmul.mubr.msk.f32.gmra.mxu0 %vm126_vm0, %v2594_v32  ;;  %433 = vmatprep.subr.mxu0 %v2596_v33  ;;  %v2751_v12 = vld [vmem:[#allocation7 + $0xa0] sm:$0xff]  ;;  %v2757_v13 = vld [vmem:[#allocation7 + $0x88] sm:$0xff]  ;;  %v2763_v14 = vld [vmem:[#allocation7 + $0x70] sm:$0xff] }
  0x4f   :  { %434 = vmatpush1.msra.mxu0 %v2599_v34  ;;  %233 = vmatprep.mubr.f32.mxu0 %v3473_v0  ;;  %v2769_v15 = vld [vmem:[#allocation7 + $0x58] sm:$0xff]  ;;  %v2775_v16 = vld [vmem:[#allocation7 + $0x40] sm:$0xff]  ;;  %v2781_v17 = vld [vmem:[#allocation7 + $0x28] sm:$0xff] }
  0x50   :  { %435 = vmatprep.subr.mxu0 %v2602_v35  ;;  %1954 = vmatprep.subr.mxu1 %v87_v49  ;;  %3492 = vst [vmem:[#allocation19_spill] sm:$0xff] %v2781_v17  ;;  %v2787_v18 = vld [vmem:[#allocation7 + $0x10] sm:$0xff] }
  0x51   :  { %436 = vmatpush1.msra.mxu0 %v2607_v36  ;;  %1955 = vmatpush3.msra.mxu1 %v87_v49  ;;  %3493 = vst [vmem:[#allocation20_spill] sm:$0xff] %v2787_v18 }
  0x52   :  { %1758 = vmatmul.mubr.msk.f32.gmra.mxu0 %vm126_vm0, %v2611_v38  ;;  %437 = vmatprep.subr.mxu0 %v2613_v39 }
  0x53   :  { %438 = vmatpush1.msra.mxu0 %v2616_v40  ;;  %239 = vmatprep.mubr.f32.mxu0 %v3473_v0 }
  0x54   :  { %439 = vmatprep.subr.mxu0 %v2619_v41  ;;  %1968 = vmatprep.subr.mxu1 %v3473_v0 }
  0x55   :  { %440 = vmatpush1.msra.mxu0 %v2624_v42  ;;  %1957 = vmatmul.mubr.msk.f32.vlgmr.msra.gmra.mxu1 %vm126_vm0, %v2577_v26  ;;  %v109_v26 = vld [vmem:[#allocation8] sm:$0x7] }
  0x56   :  { %1759 = vmatmul.mubr.msk.f32.gmra.mxu0 %vm126_vm0, %v2628_v44  ;;  %441 = vmatprep.subr.mxu0 %v2630_v45 }
  0x57   :  { %442 = vmatpush1.msra.mxu0 %v2633_v46  ;;  %245 = vmatprep.mubr.f32.mxu0 %v3473_v0 }
  0x58   :  { %443 = vmatprep.subr.mxu0 %v2636_v47  ;;  %1969 = vmatpush3.msra.mxu1 %v2675_v60 }
  0x59   :  { %444 = vmatpush1.msra.mxu0 %v2641_v48  ;;  %1970 = vmatprep.subr.mxu1 %v3473_v0 }
  0x5a   :  { %1760 = vmatmul.mubr.msk.f32.gmra.mxu0 %vm126_vm0, %v2645_v50  ;;  %445 = vmatprep.subr.mxu0 %v2647_v51 }
  0x5b   :  { %446 = vmatpush1.msra.mxu0 %v2650_v52  ;;  %251 = vmatprep.mubr.f32.mxu0 %v3473_v0 }
  0x5c   :  { %447 = vmatprep.subr.mxu0 %v2653_v53  ;;  %1971 = vmatpush3.msra.mxu1 %v2694_v3 }
  0x5d   :  { %448 = vmatpush1.msra.mxu0 %v2658_v54  ;;  %1972 = vmatprep.subr.mxu1 %v3473_v0 }
  0x5e   :  { %1761 = vmatmul.mubr.msk.f32.gmra.mxu0 %vm126_vm0, %v83_v55  ;;  %449 = vmatprep.subr.mxu0 %v2662_v56 }
  0x5f   :  { %450 = vmatpush1.msra.mxu0 %v2665_v57  ;;  %257 = vmatprep.mubr.f32.mxu0 %v3473_v0 }
  0x60   :  { %451 = vmatprep.subr.mxu0 %v2668_v58  ;;  %1973 = vmatpush3.msra.mxu1 %v2705_v5 }
  0x61   :  { %452 = vmatpush1.msra.mxu0 %v2673_v59  ;;  %1959 = vmatprep.mubr.msk.f32.mxu1 %vm126_vm0, %v2594_v32  ;;  %v117_v32 = vsub.s32 1, %v112_v21 }
  0x62   :  { %1762 = vmatmul.mubr.msk.f32.gmra.mxu0 %vm126_vm0, %v84_v61  ;;  %453 = vmatprep.subr.mxu0 %v2679_v62 }
  0x63   :  { %454 = vmatpush1.msra.mxu0 %v2682_v63  ;;  %489 = vmatprep.mubr.f32.mxu0 %v3473_v0 }
  0x64   :  { %455 = vmatprep.subr.mxu0 %v2687_v1  ;;  %1974 = vmatprep.subr.mxu1 %v3473_v0 }
  0x65   :  { %456 = vmatpush1.msra.mxu0 %v2692_v2  ;;  %1960 = vmatmul.mubr.msk.f32.gmra.mxu1 %vm126_vm0, %v2611_v38  ;;  %v114_v38 = vrot.slane %v109_v26, %v113_v25 }
  0x66   :  { %490 = vmatmul.mubr.f32.vlgmr.msra.gmra.mxu0 %v2701_v4  ;;  %1975 = vmatpush3.msra.mxu1 %v2711_v6 }
  0x67   :  { %1962 = vmatprep.mubr.msk.f32.mxu1 %vm126_vm0, %v2628_v44  ;;  %1976 = vmatprep.subr.mxu1 %v3473_v0  ;;  %v118_v44 = vrot.slane %v109_v26, %v117_v32 }
  0x68   :  { %588 = vmatprep.subr.mxu0 %v2565_v20  ;;  %1977 = vmatpush3.msra.mxu1 %v2717_v7 }
  0x69   :  { %589 = vmatpush1.msra.mxu0 %v2567_v22  ;;  %1978 = vmatprep.subr.mxu1 %v3473_v0 }
  0x6a   :  { %1963 = vmatmul.mubr.msk.f32.gmra.mxu1 %vm126_vm0, %v2645_v50  ;;  %590 = vmatprep.subr.mxu0 %v2569_v23 }
  0x6b   :  { %1979 = vmatpush3.msra.mxu1 %v2725_v8  ;;  %1965 = vmatprep.mubr.msk.f32.mxu1 %vm126_vm0, %v83_v55 }
  0x6c   :  { %1980 = vmatprep.subr.mxu1 %v3473_v0  ;;  %591 = vmatpush1.msra.mxu0 %v2573_v24 }
  0x6d   :  { %1981 = vmatpush3.msra.mxu1 %v2731_v9  ;;  %592 = vmatprep.subr.mxu0 %v2579_v27 }
  0x6e   :  { %1982 = vmatprep.subr.mxu1 %v3473_v0  ;;  %1966 = vmatmul.mubr.msk.f32.gmra.mxu1 %vm126_vm0, %v84_v61 }
  0x6f   :  { %1983 = vmatpush3.msra.mxu1 %v2738_v10  ;;  %2000 = vmatprep.mubr.msk.f32.mxu1 %vm2505_vm1, %v3473_v0 }
  0x70   :  { %1984 = vmatprep.subr.mxu1 %v3473_v0  ;;  %593 = vmatpush1.msra.mxu0 %v2582_v28 }
  0x71   :  { %1985 = vmatpush3.msra.mxu1 %v2744_v11  ;;  %594 = vmatprep.subr.mxu0 %v2585_v29 }
  0x72   :  { %1986 = vmatprep.subr.mxu1 %v3473_v0  ;;  %595 = vmatpush1.msra.mxu0 %v2590_v30 }
  0x73   :  { %1987 = vmatpush3.msra.mxu1 %v2751_v12  ;;  %596 = vmatprep.subr.mxu0 %v2596_v33 }
  0x74   :  { %1988 = vmatprep.subr.mxu1 %v3473_v0  ;;  %597 = vmatpush1.msra.mxu0 %v2599_v34 }
  0x75   :  { %1989 = vmatpush3.msra.mxu1 %v2757_v13  ;;  %598 = vmatprep.subr.mxu0 %v2602_v35 }
  0x76   :  { %1990 = vmatprep.subr.mxu1 %v3473_v0  ;;  %599 = vmatpush1.msra.mxu0 %v2607_v36 }
  0x77   :  { %1991 = vmatpush3.msra.mxu1 %v2763_v14  ;;  %600 = vmatprep.subr.mxu0 %v2613_v39 }
  0x78   :  { %1992 = vmatprep.subr.mxu1 %v3473_v0  ;;  %601 = vmatpush1.msra.mxu0 %v2616_v40 }
  0x79   :  { %1993 = vmatpush3.msra.mxu1 %v2769_v15  ;;  %602 = vmatprep.subr.mxu0 %v2619_v41 }
  0x7a   :  { %1994 = vmatprep.subr.mxu1 %v3473_v0  ;;  %603 = vmatpush1.msra.mxu0 %v2624_v42 }
  0x7b   :  { %1995 = vmatpush3.msra.mxu1 %v2775_v16  ;;  %604 = vmatprep.subr.mxu0 %v2630_v45 }
  0x7c   :  { %1996 = vmatprep.subr.mxu1 %v3473_v0  ;;  %605 = vmatpush1.msra.mxu0 %v2633_v46 }
  0x7d   :  { %1997 = vmatpush3.msra.mxu1 %v2781_v17  ;;  %606 = vmatprep.subr.mxu0 %v2636_v47 }
  0x7e   :  { %1998 = vmatprep.subr.mxu1 %v3473_v0  ;;  %607 = vmatpush1.msra.mxu0 %v2641_v48 }
  0x7f   :  { %1999 = vmatpush3.msra.mxu1 %v2787_v18  ;;  %608 = vmatprep.subr.mxu0 %v2647_v51 }
  0x80   :  { %2001 = vmatmul.mubr.f32.vlgmr.msra.gmra.mxu1 %v2701_v4  ;;  %2003 = vmatprep.subr.mxu1 %v3473_v0 }
  0x81   :  { %2004 = vmatpush3.msra.mxu1 %v2675_v60  ;;  %609 = vmatpush1.msra.mxu0 %v2650_v52 }
  0x82   :  { %2005 = vmatprep.subr.mxu1 %v3473_v0  ;;  %610 = vmatprep.subr.mxu0 %v2653_v53 }
  0x83   :  { %2006 = vmatpush3.msra.mxu1 %v2694_v3  ;;  %611 = vmatpush1.msra.mxu0 %v2658_v54 }
  0x84   :  { %2007 = vmatprep.subr.mxu1 %v3473_v0  ;;  %612 = vmatprep.subr.mxu0 %v2662_v56 }
  0x85   :  { %2008 = vmatpush3.msra.mxu1 %v2705_v5  ;;  %613 = vmatpush1.msra.mxu0 %v2665_v57 }
  0x86   :  { %2009 = vmatprep.subr.mxu1 %v3473_v0  ;;  %614 = vmatprep.subr.mxu0 %v2668_v58 }
  0x87   :  { %2010 = vmatpush3.msra.mxu1 %v2711_v6  ;;  %615 = vmatpush1.msra.mxu0 %v2673_v59 }
  0x88   :  { %2011 = vmatprep.subr.mxu1 %v3473_v0  ;;  %616 = vmatprep.subr.mxu0 %v2679_v62 }
  0x89   :  { %2012 = vmatpush3.msra.mxu1 %v2717_v7  ;;  %617 = vmatpush1.msra.mxu0 %v2682_v63 }
  0x8a   :  { %2013 = vmatprep.subr.mxu1 %v3473_v0  ;;  %618 = vmatprep.subr.mxu0 %v2687_v1 }
  0x8b   :  { %2014 = vmatpush3.msra.mxu1 %v2725_v8  ;;  %619 = vmatpush1.msra.mxu0 %v2692_v2 }
  0x8c   :  { %2015 = vmatprep.subr.mxu1 %v3473_v0  ;;  %652 = vmatprep.mubr.f32.mxu0 %v3473_v0 }
  0x8d   :  { %2016 = vmatpush3.msra.mxu1 %v2731_v9  ;;  %2035 = vmatprep.mubr.msk.f32.mxu1 %vm2505_vm1, %v3473_v0 }
  0x8e   :  { %2017 = vmatprep.subr.mxu1 %v3473_v0  ;;  %752 = vmatprep.subr.mxu0 %v2565_v20 }
  0x8f   :  { %2018 = vmatpush3.msra.mxu1 %v2738_v10 }
  0x90   :  { %2019 = vmatprep.subr.mxu1 %v3473_v0 }
  0x91   :  { %2020 = vmatpush3.msra.mxu1 %v2744_v11 }
  0x92   :  { %2021 = vmatprep.subr.mxu1 %v3473_v0 }
  0x93   :  { %2022 = vmatpush3.msra.mxu1 %v2751_v12 }
  0x94   :  { %2023 = vmatprep.subr.mxu1 %v3473_v0 }
  0x95   :  { %2024 = vmatpush3.msra.mxu1 %v2757_v13 }
  0x96   :  { %2025 = vmatprep.subr.mxu1 %v3473_v0 }
  0x97   :  { %2026 = vmatpush3.msra.mxu1 %v2763_v14 }
  0x98   :  { %2027 = vmatprep.subr.mxu1 %v3473_v0 }
  0x99   :  { %2028 = vmatpush3.msra.mxu1 %v2769_v15 }
  0x9a   :  { %2029 = vmatprep.subr.mxu1 %v3473_v0 }
  0x9b   :  { %2030 = vmatpush3.msra.mxu1 %v2775_v16 }
  0x9c   :  { %2031 = vmatprep.subr.mxu1 %v3473_v0 }
  0x9d   :  { %2032 = vmatpush3.msra.mxu1 %v2781_v17 }
  0x9e   :  { %2033 = vmatprep.subr.mxu1 %v3473_v0 }
  0x9f   :  { %2034 = vmatpush3.msra.mxu1 %v2787_v18 }
  0xa0   :  { %2038 = vmatprep.subr.mxu1 %v3473_v0 }
 0x106   :  { %v217_v31 = vpop.f32.mrf.mxu0 }
 0x108   :  { %v219_v37 = vpop.f32.mrf.mxu0 }
 0x10a   :  { %v223_v43 = vpop.f32.mrf.mxu0 }
 0x10b   :  { %v2846_v49 = vadd.f32 %v223_v43, %v114_v38 }
 0x10c   :  { %v225_v50 = vpop.f32.mrf.mxu0 }
 0x10d   :  { %3494 = vst [vmem:[#allocation21_spill] sm:$0xff] %v2846_v49  ;;  %v2848_v55 = vadd.f32 %v225_v50, %v118_v44  ;;  %v121_v50 = vsub.s32 2, %v112_v21 }
 0x10e   :  { %v229_v61 = vpop.f32.mrf.mxu0 }
 0x10f   :  { %3495 = vst [vmem:[#allocation22_spill] sm:$0xff] %v2848_v55  ;;  %v2850_v20 = vadd.f32 %v229_v61, %v114_v38 }
 0x110   :  { %v231_v18 = vpop.f32.mrf.mxu0 }
 0x111   :  { %3496 = vst [vmem:[#allocation23_spill] sm:$0xff] %v2850_v20  ;;  %v2852_v0 = vadd.f32 %v231_v18, %v118_v44  ;;  %v122_v18 = vrot.slane %v109_v26, %v121_v50 }
 0x112   :  { %v235_v19 = vpop.f32.mrf.mxu0 }
 0x113   :  { %3497 = vst [vmem:[#allocation24_spill] sm:$0xff] %v2852_v0  ;;  %v2854_v2 = vadd.f32 %v235_v19, %v114_v38 }
 0x114   :  { %v237_v1 = vpop.f32.mrf.mxu0 }
 0x115   :  { %3498 = vst [vmem:[#allocation25_spill] sm:$0xff] %v2854_v2  ;;  %v2856_v17 = vadd.f32 %v237_v1, %v118_v44  ;;  %v1958_v1 = vpop.f32.mrf.mxu1 }
 0x116   :  { %v241_v25 = vpop.f32.mrf.mxu0 }
 0x117   :  { %3499 = vst [vmem:[#allocation26_spill] sm:$0xff] %v2856_v17  ;;  %v2858_v63 = vadd.f32 %v241_v25, %v114_v38  ;;  %v2870_v25 = vadd.f32 %v1958_v1, %v122_v18 }
 0x118   :  { %v243_v32 = vpop.f32.mrf.mxu0 }
 0x119   :  { %3500 = vst [vmem:[#allocation27_spill] sm:$0xff] %v2858_v63  ;;  %v2860_v43 = vadd.f32 %v243_v32, %v118_v44  ;;  %3506 = vst [vmem:[#allocation33_spill] sm:$0xff] %v2870_v25 }
 0x11a   :  { %v247_v55 = vpop.f32.mrf.mxu0 }
 0x11b   :  { %3501 = vst [vmem:[#allocation28_spill] sm:$0xff] %v2860_v43  ;;  %v2862_v49 = vadd.f32 %v247_v55, %v114_v38  ;;  %v218_v43 = vadd.f32 %v217_v31, %v114_v38  ;;  %v220_v31 = vadd.f32 %v219_v37, %v118_v44 }
 0x11c   :  { %v249_v61 = vpop.f32.mrf.mxu0 }
 0x11d   :  { %3502 = vst [vmem:[#allocation29_spill] sm:$0xff] %v2862_v49  ;;  %v2864_v20 = vadd.f32 %v249_v61, %v118_v44  ;;  %v330_v61 = vpop.f32.mrf.mxu1 }
 0x11e   :  { %v253_v0 = vpop.f32.mrf.mxu0 }
 0x11f   :  { %3503 = vst [vmem:[#allocation30_spill] sm:$0xff] %v2864_v20  ;;  %v2866_v19 = vadd.f32 %v253_v0, %v114_v38 }
 0x120   :  { %v255_v2 = vpop.f32.mrf.mxu0 }
 0x121   :  { %3504 = vst [vmem:[#allocation31_spill] sm:$0xff] %v2866_v19  ;;  %v2868_v17 = vadd.f32 %v255_v2, %v118_v44 }
 0x122   :  { %v259_v63 = vpop.f32.mrf.mxu0 }
 0x123   :  { %3505 = vst [vmem:[#allocation32_spill] sm:$0xff] %v2868_v17  ;;  %v2872_v32 = vadd.f32 %v259_v63, %v114_v38 }
 0x124   :  { %v261_v21 = vpop.f32.mrf.mxu0 }
 0x125   :  { %3507 = vst [vmem:[#allocation34_spill] sm:$0xff] %v2872_v32  ;;  %v2874_v55 = vadd.f32 %v261_v21, %v118_v44  ;;  %v1961_v26 = vpop.f32.mrf.mxu1 }
 0x126   :  { %v491_v49 = vpop.f32.mrf.mxu0  ;;  %v2876_v0 = vadd.f32 %v1961_v26, %v122_v18 }
 0x127   :  { %3508 = vst [vmem:[#allocation35_spill] sm:$0xff] %v2874_v55  ;;  %v566_v20 = vadd.f32 %v491_v49, %v218_v43  ;;  %v340_v19 = vpop.f32.mrf.mxu1 }
 0x128   :  { %3509 = vst [vmem:[#allocation36_spill] sm:$0xff] %v2876_v0  ;;  %v2878_v2 = vadd.f32 %v340_v19, %v122_v18  ;;  %v493_v32 = vpop.f32.mrf.mxu0  ;;  %v2891_v19 = vld [vmem:[%s3466_s4] ss:$0 sm:$0xff] }
 0x129   :  { %v1772_v50 = vmul.f32 -1.442695, %v566_v20  ;;  %v567_v49 = vadd.f32 %v493_v32, %v220_v31  ;;  %v331_v32 = vadd.f32 %v330_v61, %v122_v18  ;;  %v3517_v61 = vld [vmem:[#allocation19_spill] sm:$0xff] }
 0x12a   :  { %3510 = vst [vmem:[#allocation37_spill] sm:$0xff] %v2878_v2  ;;  %v1964_v1 = vpop.f32.mrf.mxu1 }
 0x12b   :  { %2259 = vpow2.f32 %v1772_v50  ;;  %v2880_v17 = vadd.f32 %v1964_v1, %v122_v18  ;;  %v1773_v26 = vmul.f32 -1.442695, %v567_v49 }
 0x12c   :  { %v350_v63 = vpop.f32.mrf.mxu1 }
 0x12d   :  { %3511 = vst [vmem:[#allocation38_spill] sm:$0xff] %v2880_v17  ;;  %v2882_v25 = vadd.f32 %v350_v63, %v122_v18  ;;  %2261 = vpow2.f32 %v1773_v26 }
 0x12e   :  { %v1967_v38 = vpop.f32.mrf.mxu1 }
 0x12f   :  { %3512 = vst [vmem:[#allocation39_spill] sm:$0xff] %v2882_v25  ;;  %v2884_v21 = vadd.f32 %v1967_v38, %v122_v18 }
 0x130   :  { %v360_v43 = vpop.f32.mrf.mxu1 }
 0x131   :  { %3513 = vst [vmem:[#allocation40_spill] sm:$0xff] %v2884_v21  ;;  %v2886_v20 = vadd.f32 %v360_v43, %v122_v18  ;;  %v3515_v18 = vmov 0.0  }
 0x133   :  { %3514 = vst [vmem:[#allocation41_spill] sm:$0xff] %v2886_v20 }
 0x138   :  { %v2260_v55 = vpop.eup %2259 }
 0x139   :  { %v574_v50 = vadd.f32 1.0, %v2260_v55 }
 0x13a   :  { %v2262_v44 = vpop.eup %2261 }
 0x13b   :  { %2263 = vrcp.f32 %v574_v50  ;;  %v575_v43 = vadd.f32 1.0, %v2262_v44 }
 0x140   :  { %v562_v1 = vpop.f32.mrf.mxu1 }
 0x141   :  { %v580_v37 = vadd.f32 %v2891_v19, %v562_v1  ;;  %v3519_v1 = vld [vmem:[#allocation18_spill] sm:$0xff] }
 0x142   :  { %v2002_v63 = vpop.f32.mrf.mxu1 }
 0x143   :  { %v3520_v63 = vld [vmem:[#allocation20_spill] sm:$0xff] }
 0x148   :  { %v2264_v38 = vpop.eup %2263 }
 0x149   :  { %v581_v31 = vmul.f32 %v2264_v38, %v580_v37  ;;  %v3521_v37 = vld [vmem:[#allocation15_spill] sm:$0xff] }
 0x14b   :  { %v582_v21 = vadd.f32 %v581_v31, %v331_v32  ;;  %v3522_v32 = vld [vmem:[#allocation21_spill] sm:$0xff] }
 0x14d   :  { %2265 = vtanh.f32 %v582_v21  ;;  %v3518_v21 = vld [vmem:[#allocation17_spill] sm:$0xff] }
 0x14e   :  { %2267 = vrcp.f32 %v575_v43 }
 0x15a   :  { %v2266_v55 = vpop.eup %2265 }
 0x15b   :  { %v584_v49 = vsub.f32 %v2701_v4, %v2266_v55  ;;  %v2268_v26 = vpop.eup %2267  ;;  %v3516_v4 = vld [vmem:[#allocation16_spill] sm:$0xff] }
 0x15d   :  { %v585_v50 = vmul.f32 %v2268_v26, %v584_v49  ;;  %v3523_v26 = vld [vmem:[#allocation22_spill] sm:$0xff] }
 0x15f   :  { %v2895_v20 = vadd.f32 %v2266_v55, %v585_v50 }
 0x161   :  { %587 = vst [vmem:[#allocation10] sm:$0xff] %v2895_v20  ;;  %653 = vmatmul.mubr.f32.vlgmr.msra.gmra.mxu0 %v2895_v20  ;;  %2036 = vmatmul.mubr.f32.vlgmr.msra.gmra.mxu1 %v2895_v20 }
 0x162   :  { %753 = vmatpush1.msra.mxu0 %v2567_v22  ;;  %2039 = vmatpush3.msra.mxu1 %v2675_v60 }
 0x163   :  { %754 = vmatprep.subr.mxu0 %v2569_v23  ;;  %2040 = vmatprep.subr.mxu1 %v3515_v18 }
 0x164   :  { %755 = vmatpush1.msra.mxu0 %v2573_v24  ;;  %2041 = vmatpush3.msra.mxu1 %v2694_v3 }
 0x165   :  { %756 = vmatprep.subr.mxu0 %v2579_v27  ;;  %2042 = vmatprep.subr.mxu1 %v3515_v18 }
 0x166   :  { %757 = vmatpush1.msra.mxu0 %v2582_v28  ;;  %2043 = vmatpush3.msra.mxu1 %v2705_v5 }
 0x167   :  { %758 = vmatprep.subr.mxu0 %v2585_v29  ;;  %2044 = vmatprep.subr.mxu1 %v3515_v18 }
 0x168   :  { %759 = vmatpush1.msra.mxu0 %v2590_v30  ;;  %2045 = vmatpush3.msra.mxu1 %v2711_v6 }
 0x169   :  { %760 = vmatprep.subr.mxu0 %v2596_v33  ;;  %2046 = vmatprep.subr.mxu1 %v3515_v18 }
 0x16a   :  { %761 = vmatpush1.msra.mxu0 %v2599_v34  ;;  %2047 = vmatpush3.msra.mxu1 %v2717_v7 }
 0x16b   :  { %762 = vmatprep.subr.mxu0 %v2602_v35  ;;  %2048 = vmatprep.subr.mxu1 %v3515_v18 }
 0x16c   :  { %763 = vmatpush1.msra.mxu0 %v2607_v36  ;;  %2049 = vmatpush3.msra.mxu1 %v2725_v8 }
 0x16d   :  { %764 = vmatprep.subr.mxu0 %v2613_v39  ;;  %2050 = vmatprep.subr.mxu1 %v3515_v18 }
 0x16e   :  { %765 = vmatpush1.msra.mxu0 %v2616_v40  ;;  %2051 = vmatpush3.msra.mxu1 %v2731_v9 }
 0x16f   :  { %766 = vmatprep.subr.mxu0 %v2619_v41  ;;  %2052 = vmatprep.subr.mxu1 %v3515_v18 }
 0x170   :  { %767 = vmatpush1.msra.mxu0 %v2624_v42  ;;  %2053 = vmatpush3.msra.mxu1 %v2738_v10 }
 0x171   :  { %768 = vmatprep.subr.mxu0 %v2630_v45  ;;  %2054 = vmatprep.subr.mxu1 %v3515_v18 }
 0x172   :  { %769 = vmatpush1.msra.mxu0 %v2633_v46  ;;  %2055 = vmatpush3.msra.mxu1 %v2744_v11 }
 0x173   :  { %770 = vmatprep.subr.mxu0 %v2636_v47  ;;  %2056 = vmatprep.subr.mxu1 %v3515_v18 }
 0x174   :  { %771 = vmatpush1.msra.mxu0 %v2641_v48  ;;  %2057 = vmatpush3.msra.mxu1 %v2751_v12 }
 0x175   :  { %772 = vmatprep.subr.mxu0 %v2647_v51  ;;  %2058 = vmatprep.subr.mxu1 %v3515_v18 }
 0x176   :  { %773 = vmatpush1.msra.mxu0 %v2650_v52  ;;  %2059 = vmatpush3.msra.mxu1 %v2757_v13 }
 0x177   :  { %774 = vmatprep.subr.mxu0 %v2653_v53  ;;  %2060 = vmatprep.subr.mxu1 %v3515_v18 }
 0x178   :  { %775 = vmatpush1.msra.mxu0 %v2658_v54  ;;  %2061 = vmatpush3.msra.mxu1 %v2763_v14 }
 0x179   :  { %776 = vmatprep.subr.mxu0 %v2662_v56  ;;  %2062 = vmatprep.subr.mxu1 %v3515_v18 }
 0x17a   :  { %777 = vmatpush1.msra.mxu0 %v2665_v57  ;;  %2063 = vmatpush3.msra.mxu1 %v2769_v15 }
 0x17b   :  { %778 = vmatprep.subr.mxu0 %v2668_v58  ;;  %2064 = vmatprep.subr.mxu1 %v3515_v18 }
 0x17c   :  { %779 = vmatpush1.msra.mxu0 %v2673_v59  ;;  %2065 = vmatpush3.msra.mxu1 %v2775_v16 }
 0x17d   :  { %780 = vmatprep.subr.mxu0 %v2679_v62  ;;  %2066 = vmatprep.subr.mxu1 %v3515_v18 }
 0x17e   :  { %781 = vmatpush1.msra.mxu0 %v3516_v4  ;;  %2067 = vmatpush3.msra.mxu1 %v3517_v61 }
 0x17f   :  { %782 = vmatprep.subr.mxu0 %v3518_v21  ;;  %2068 = vmatprep.subr.mxu1 %v3515_v18  ;;  %v3524_v21 = vld [vmem:[#allocation33_spill] sm:$0xff] }
 0x180   :  { %783 = vmatpush1.msra.mxu0 %v3519_v1  ;;  %816 = vmatprep.mubr.f32.mxu0 %v3515_v18 }
 0x181   :  { %2069 = vmatpush3.msra.mxu1 %v3520_v63  ;;  %2070 = vmatprep.mubr.msk.f32.mxu1 %vm2505_vm1, %v3515_v18 }
 0x182   :  { %916 = vmatprep.subr.mxu0 %v3521_v37  ;;  %2073 = vmatprep.subr.mxu1 %v3515_v18 }
 0x221   :  { %v654_v44 = vpop.f32.mrf.mxu0  ;;  %v725_v38 = vpop.f32.mrf.mxu1 }
 0x222   :  { %v729_v31 = vadd.f32 %v654_v44, %v3522_v32  ;;  %v743_v37 = vadd.f32 %v2891_v19, %v725_v38 }
 0x223   :  { %v2037_v43 = vpop.f32.mrf.mxu1  ;;  %v656_v49 = vpop.f32.mrf.mxu0 }
 0x224   :  { %v1774_v55 = vmul.f32 -1.442695, %v729_v31  ;;  %v730_v50 = vadd.f32 %v656_v49, %v3523_v26  ;;  %v3532_v26 = vld [vmem:[#allocation24_spill] sm:$0xff] }
 0x226   :  { %2269 = vpow2.f32 %v1774_v55  ;;  %v1775_v17 = vmul.f32 -1.442695, %v730_v50 }
 0x228   :  { %2271 = vpow2.f32 %v1775_v17  ;;  %v3525_v17 = vld [vmem:[#allocation16_spill] sm:$0xff] }
 0x233   :  { %v2270_v25 = vpop.eup %2269 }
 0x234   :  { %v737_v0 = vadd.f32 1.0, %v2270_v25  ;;  %v3526_v25 = vld [vmem:[#allocation19_spill] sm:$0xff] }
 0x235   :  { %v2272_v2 = vpop.eup %2271 }
 0x236   :  { %2273 = vrcp.f32 %v737_v0  ;;  %v738_v4 = vadd.f32 1.0, %v2272_v2  ;;  %v3527_v0 = vld [vmem:[#allocation17_spill] sm:$0xff]  ;;  %v3528_v2 = vld [vmem:[#allocation18_spill] sm:$0xff] }
 0x243   :  { %v2274_v63 = vpop.eup %2273 }
 0x244   :  { %v744_v1 = vmul.f32 %v2274_v63, %v743_v37 }
 0x246   :  { %v745_v61 = vadd.f32 %v744_v1, %v3524_v21  ;;  %v3531_v1 = vld [vmem:[#allocation23_spill] sm:$0xff] }
 0x248   :  { %2275 = vtanh.f32 %v745_v61 }
 0x249   :  { %2277 = vrcp.f32 %v738_v4  ;;  %v3530_v4 = vld [vmem:[#allocation15_spill] sm:$0xff] }
 0x255   :  { %v2276_v44 = vpop.eup %2275 }
 0x256   :  { %v747_v32 = vsub.f32 %v2895_v20, %v2276_v44  ;;  %v2278_v31 = vpop.eup %2277  ;;  %v3529_v20 = vld [vmem:[#allocation20_spill] sm:$0xff] }
 0x258   :  { %v748_v43 = vmul.f32 %v2278_v31, %v747_v32 }
 0x25a   :  { %v2972_v55 = vadd.f32 %v2276_v44, %v748_v43 }
 0x25c   :  { %751 = vst [vmem:[#allocation10 + $0x8] sm:$0xff] %v2972_v55  ;;  %817 = vmatmul.mubr.f32.vlgmr.msra.gmra.mxu0 %v2972_v55  ;;  %2071 = vmatmul.mubr.f32.vlgmr.msra.gmra.mxu1 %v2972_v55 }
 0x25d   :  { %917 = vmatpush1.msra.mxu0 %v2567_v22  ;;  %2074 = vmatpush3.msra.mxu1 %v2675_v60 }
 0x25e   :  { %918 = vmatprep.subr.mxu0 %v2569_v23  ;;  %2075 = vmatprep.subr.mxu1 %v3515_v18 }
 0x25f   :  { %919 = vmatpush1.msra.mxu0 %v2573_v24  ;;  %2076 = vmatpush3.msra.mxu1 %v2694_v3 }
 0x260   :  { %920 = vmatprep.subr.mxu0 %v2579_v27  ;;  %2077 = vmatprep.subr.mxu1 %v3515_v18 }
 0x261   :  { %921 = vmatpush1.msra.mxu0 %v2582_v28  ;;  %2078 = vmatpush3.msra.mxu1 %v2705_v5 }
 0x262   :  { %922 = vmatprep.subr.mxu0 %v2585_v29  ;;  %2079 = vmatprep.subr.mxu1 %v3515_v18 }
 0x263   :  { %923 = vmatpush1.msra.mxu0 %v2590_v30  ;;  %2080 = vmatpush3.msra.mxu1 %v2711_v6 }
 0x264   :  { %924 = vmatprep.subr.mxu0 %v2596_v33  ;;  %2081 = vmatprep.subr.mxu1 %v3515_v18 }
 0x265   :  { %925 = vmatpush1.msra.mxu0 %v2599_v34  ;;  %2082 = vmatpush3.msra.mxu1 %v2717_v7 }
 0x266   :  { %926 = vmatprep.subr.mxu0 %v2602_v35  ;;  %2083 = vmatprep.subr.mxu1 %v3515_v18 }
 0x267   :  { %927 = vmatpush1.msra.mxu0 %v2607_v36  ;;  %2084 = vmatpush3.msra.mxu1 %v2725_v8 }
 0x268   :  { %928 = vmatprep.subr.mxu0 %v2613_v39  ;;  %2085 = vmatprep.subr.mxu1 %v3515_v18 }
 0x269   :  { %929 = vmatpush1.msra.mxu0 %v2616_v40  ;;  %2086 = vmatpush3.msra.mxu1 %v2731_v9 }
 0x26a   :  { %930 = vmatprep.subr.mxu0 %v2619_v41  ;;  %2087 = vmatprep.subr.mxu1 %v3515_v18 }
 0x26b   :  { %931 = vmatpush1.msra.mxu0 %v2624_v42  ;;  %2088 = vmatpush3.msra.mxu1 %v2738_v10 }
 0x26c   :  { %932 = vmatprep.subr.mxu0 %v2630_v45  ;;  %2089 = vmatprep.subr.mxu1 %v3515_v18 }
 0x26d   :  { %933 = vmatpush1.msra.mxu0 %v2633_v46  ;;  %2090 = vmatpush3.msra.mxu1 %v2744_v11 }
 0x26e   :  { %934 = vmatprep.subr.mxu0 %v2636_v47  ;;  %2091 = vmatprep.subr.mxu1 %v3515_v18 }
 0x26f   :  { %935 = vmatpush1.msra.mxu0 %v2641_v48  ;;  %2092 = vmatpush3.msra.mxu1 %v2751_v12 }
 0x270   :  { %936 = vmatprep.subr.mxu0 %v2647_v51  ;;  %2093 = vmatprep.subr.mxu1 %v3515_v18 }
 0x271   :  { %937 = vmatpush1.msra.mxu0 %v2650_v52  ;;  %2094 = vmatpush3.msra.mxu1 %v2757_v13 }
 0x272   :  { %938 = vmatprep.subr.mxu0 %v2653_v53  ;;  %2095 = vmatprep.subr.mxu1 %v3515_v18 }
 0x273   :  { %939 = vmatpush1.msra.mxu0 %v2658_v54  ;;  %2096 = vmatpush3.msra.mxu1 %v2763_v14 }
 0x274   :  { %940 = vmatprep.subr.mxu0 %v2662_v56  ;;  %2097 = vmatprep.subr.mxu1 %v3515_v18 }
 0x275   :  { %941 = vmatpush1.msra.mxu0 %v2665_v57  ;;  %2098 = vmatpush3.msra.mxu1 %v2769_v15 }
 0x276   :  { %942 = vmatprep.subr.mxu0 %v2668_v58  ;;  %2099 = vmatprep.subr.mxu1 %v3515_v18 }
 0x277   :  { %943 = vmatpush1.msra.mxu0 %v2673_v59  ;;  %2100 = vmatpush3.msra.mxu1 %v2775_v16 }
 0x278   :  { %944 = vmatprep.subr.mxu0 %v2679_v62  ;;  %2101 = vmatprep.subr.mxu1 %v3515_v18 }
 0x279   :  { %945 = vmatpush1.msra.mxu0 %v3525_v17  ;;  %2102 = vmatpush3.msra.mxu1 %v3526_v25 }
 0x27a   :  { %946 = vmatprep.subr.mxu0 %v3527_v0  ;;  %2103 = vmatprep.subr.mxu1 %v3515_v18  ;;  %v3533_v0 = vld [vmem:[#allocation37_spill] sm:$0xff] }
 0x27b   :  { %947 = vmatpush1.msra.mxu0 %v3528_v2  ;;  %980 = vmatprep.mubr.f32.mxu0 %v3515_v18 }
 0x27c   :  { %2104 = vmatpush3.msra.mxu1 %v3529_v20  ;;  %2105 = vmatprep.mubr.msk.f32.mxu1 %vm2505_vm1, %v3515_v18 }
 0x27d   :  { %1080 = vmatprep.subr.mxu0 %v3530_v4  ;;  %2108 = vmatprep.subr.mxu1 %v3515_v18 }
 0x31c   :  { %v818_v61 = vpop.f32.mrf.mxu0  ;;  %v889_v21 = vpop.f32.mrf.mxu1 }
 0x31d   :  { %v893_v63 = vadd.f32 %v818_v61, %v3531_v1  ;;  %v907_v4 = vadd.f32 %v2891_v19, %v889_v21  ;;  %v3151_v21 = vld [vmem:[#allocation7 + $0x138] sm:$0xff] }
 0x31e   :  { %v2072_v37 = vpop.f32.mrf.mxu1  ;;  %v820_v49 = vpop.f32.mrf.mxu0 }
 0x31f   :  { %v1776_v38 = vmul.f32 -1.442695, %v893_v63  ;;  %v894_v50 = vadd.f32 %v820_v49, %v3532_v26  ;;  %v3155_v49 = vld [vmem:[#allocation7 + $0x128] sm:$0xff]  ;;  %v3159_v26 = vld [vmem:[#allocation7 + $0x120] sm:$0xff] }
 0x321   :  { %2279 = vpow2.f32 %v1776_v38  ;;  %v1777_v44 = vmul.f32 -1.442695, %v894_v50  ;;  %v3167_v50 = vld [vmem:[#allocation7 + $0x108] sm:$0xff] }
 0x323   :  { %2281 = vpow2.f32 %v1777_v44  ;;  %v3175_v44 = vld [vmem:[#allocation7 + $0xf0] sm:$0xff] }
 0x32e   :  { %v2280_v32 = vpop.eup %2279 }
 0x32f   :  { %v901_v31 = vadd.f32 1.0, %v2280_v32  ;;  %v3183_v32 = vld [vmem:[#allocation7 + $0xd8] sm:$0xff] }
 0x330   :  { %v2282_v43 = vpop.eup %2281 }
 0x331   :  { %2283 = vrcp.f32 %v901_v31  ;;  %v902_v17 = vadd.f32 1.0, %v2282_v43  ;;  %v3191_v31 = vld [vmem:[#allocation7 + $0xc0] sm:$0xff]  ;;  %v3199_v43 = vld [vmem:[#allocation7 + $0xa8] sm:$0xff] }
 0x33e   :  { %v2284_v20 = vpop.eup %2283 }
 0x33f   :  { %v908_v2 = vmul.f32 %v2284_v20, %v907_v4  ;;  %v3147_v20 = vld [vmem:[#allocation7 + $0x140] sm:$0xff]  ;;  %v3207_v4 = vld [vmem:[#allocation7 + $0x90] sm:$0xff] }
 0x341   :  { %v909_v25 = vadd.f32 %v908_v2, %v3533_v0  ;;  %v3139_v0 = vld [vmem:[#allocation7 + $0x158] sm:$0xff]  ;;  %v3143_v2 = vld [vmem:[#allocation7 + $0x150] sm:$0xff] }
 0x343   :  { %2285 = vtanh.f32 %v909_v25  ;;  %v3136_v25 = vld [vmem:[#allocation7 + $0x178] sm:$0xff] }
 0x344   :  { %2287 = vrcp.f32 %v902_v17  ;;  %v3133_v17 = vld [vmem:[#allocation7 + $0x168] sm:$0xff] }
 0x350   :  { %v2286_v61 = vpop.eup %2285 }
 0x351   :  { %v911_v1 = vsub.f32 %v2972_v55, %v2286_v61  ;;  %v2288_v63 = vpop.eup %2287 }
 0x353   :  { %v912_v37 = vmul.f32 %v2288_v63, %v911_v1  ;;  %v3223_v1 = vld [vmem:[#allocation7 + $0x60] sm:$0xff]  ;;  %v3231_v63 = vld [vmem:[#allocation7 + $0x48] sm:$0xff] }
 0x355   :  { %v3049_v38 = vadd.f32 %v2286_v61, %v912_v37  ;;  %v3215_v61 = vld [vmem:[#allocation7 + $0x78] sm:$0xff]  ;;  %v3239_v37 = vld [vmem:[#allocation7 + $0x30] sm:$0xff] }
 0x357   :  { %915 = vst [vmem:[#allocation10 + $0x10] sm:$0xff] %v3049_v38  ;;  %981 = vmatmul.mubr.f32.vlgmr.msra.gmra.mxu0 %v3049_v38  ;;  %2106 = vmatmul.mubr.f32.vlgmr.msra.gmra.mxu1 %v3049_v38 }
 0x358   :  { %1081 = vmatpush1.msra.mxu0 %v2567_v22  ;;  %2109 = vmatpush3.msra.mxu1 %v2675_v60  ;;  %v3534_v22 = vld [vmem:[#allocation16_spill] sm:$0xff] }
 0x359   :  { %1082 = vmatprep.subr.mxu0 %v2569_v23  ;;  %2110 = vmatprep.subr.mxu1 %v3515_v18  ;;  %v3535_v23 = vld [vmem:[#allocation19_spill] sm:$0xff] }
 0x35a   :  { %1083 = vmatpush1.msra.mxu0 %v2573_v24  ;;  %2111 = vmatpush3.msra.mxu1 %v2694_v3  ;;  %v3536_v24 = vld [vmem:[#allocation17_spill] sm:$0xff] }
 0x35b   :  { %1084 = vmatprep.subr.mxu0 %v2579_v27  ;;  %2112 = vmatprep.subr.mxu1 %v3515_v18  ;;  %v3537_v27 = vld [vmem:[#allocation18_spill] sm:$0xff] }
 0x35c   :  { %1085 = vmatpush1.msra.mxu0 %v2582_v28  ;;  %2113 = vmatpush3.msra.mxu1 %v2705_v5  ;;  %v3538_v28 = vld [vmem:[#allocation20_spill] sm:$0xff] }
 0x35d   :  { %1086 = vmatprep.subr.mxu0 %v2585_v29  ;;  %2114 = vmatprep.subr.mxu1 %v3515_v18  ;;  %v3119_v29 = vld [vmem:[#allocation7 + $0x170] sm:$0xff] }
 0x35e   :  { %1087 = vmatpush1.msra.mxu0 %v2590_v30  ;;  %2115 = vmatpush3.msra.mxu1 %v2711_v6 }
 0x35f   :  { %1088 = vmatprep.subr.mxu0 %v2596_v33  ;;  %2116 = vmatprep.subr.mxu1 %v3515_v18 }
 0x360   :  { %1089 = vmatpush1.msra.mxu0 %v2599_v34  ;;  %2117 = vmatpush3.msra.mxu1 %v2717_v7  ;;  %v3539_v34 = vld [vmem:[#allocation25_spill] sm:$0xff] }
 0x361   :  { %1090 = vmatprep.subr.mxu0 %v2602_v35  ;;  %2118 = vmatprep.subr.mxu1 %v3515_v18 }
 0x362   :  { %1091 = vmatpush1.msra.mxu0 %v2607_v36  ;;  %2119 = vmatpush3.msra.mxu1 %v2725_v8 }
 0x363   :  { %1092 = vmatprep.subr.mxu0 %v2613_v39  ;;  %2120 = vmatprep.subr.mxu1 %v3515_v18 }
 0x364   :  { %1093 = vmatpush1.msra.mxu0 %v2616_v40  ;;  %2121 = vmatpush3.msra.mxu1 %v2731_v9 }
 0x365   :  { %1094 = vmatprep.subr.mxu0 %v2619_v41  ;;  %2122 = vmatprep.subr.mxu1 %v3515_v18  ;;  %v3540_v41 = vld [vmem:[#allocation26_spill] sm:$0xff] }
 0x366   :  { %1095 = vmatpush1.msra.mxu0 %v2624_v42  ;;  %2123 = vmatpush3.msra.mxu1 %v2738_v10 }
 0x367   :  { %1096 = vmatprep.subr.mxu0 %v2630_v45  ;;  %2124 = vmatprep.subr.mxu1 %v3515_v18 }
 0x368   :  { %1097 = vmatpush1.msra.mxu0 %v2633_v46  ;;  %2125 = vmatpush3.msra.mxu1 %v2744_v11 }
 0x369   :  { %1098 = vmatprep.subr.mxu0 %v2636_v47  ;;  %2126 = vmatprep.subr.mxu1 %v3515_v18 }
 0x36a   :  { %1099 = vmatpush1.msra.mxu0 %v2641_v48  ;;  %2127 = vmatpush3.msra.mxu1 %v2751_v12 }
 0x36b   :  { %1100 = vmatprep.subr.mxu0 %v2647_v51  ;;  %2128 = vmatprep.subr.mxu1 %v3515_v18 }
 0x36c   :  { %1101 = vmatpush1.msra.mxu0 %v2650_v52  ;;  %2129 = vmatpush3.msra.mxu1 %v2757_v13 }
 0x36d   :  { %1102 = vmatprep.subr.mxu0 %v2653_v53  ;;  %2130 = vmatprep.subr.mxu1 %v3515_v18 }
 0x36e   :  { %1103 = vmatpush1.msra.mxu0 %v2658_v54  ;;  %2131 = vmatpush3.msra.mxu1 %v2763_v14  ;;  %v3541_v54 = vld [vmem:[#allocation36_spill] sm:$0xff] }
 0x36f   :  { %1104 = vmatprep.subr.mxu0 %v2662_v56  ;;  %2132 = vmatprep.subr.mxu1 %v3515_v18 }
 0x370   :  { %1105 = vmatpush1.msra.mxu0 %v2665_v57  ;;  %2133 = vmatpush3.msra.mxu1 %v2769_v15 }
 0x371   :  { %1106 = vmatprep.subr.mxu0 %v2668_v58  ;;  %2134 = vmatprep.subr.mxu1 %v3515_v18 }
 0x372   :  { %1107 = vmatpush1.msra.mxu0 %v2673_v59  ;;  %2135 = vmatpush3.msra.mxu1 %v2775_v16 }
 0x373   :  { %1108 = vmatprep.subr.mxu0 %v2679_v62  ;;  %2136 = vmatprep.subr.mxu1 %v3515_v18 }
 0x374   :  { %1109 = vmatpush1.msra.mxu0 %v3534_v22  ;;  %2137 = vmatpush3.msra.mxu1 %v3535_v23  ;;  %v3255_v22 = vld [vmem:[#allocation7] sm:$0xff] }
 0x375   :  { %1110 = vmatprep.subr.mxu0 %v3536_v24  ;;  %2138 = vmatprep.subr.mxu1 %v3515_v18  ;;  %3544 = vst [vmem:[#allocation33_spill] sm:$0xff] %v3255_v22  ;;  %v3545_v24 = vld [vmem:[#allocation27_spill] sm:$0xff] }
 0x376   :  { %1111 = vmatpush1.msra.mxu0 %v3537_v27  ;;  %1144 = vmatprep.mubr.f32.mxu0 %v3515_v18 }
 0x377   :  { %2139 = vmatpush3.msra.mxu1 %v3538_v28  ;;  %2140 = vmatprep.mubr.msk.f32.mxu1 %vm2505_vm1, %v3515_v18 }
 0x378   :  { %1244 = vmatprep.subr.mxu0 %v3119_v29  ;;  %2143 = vmatprep.subr.mxu1 %v3515_v18 }
 0x417   :  { %v982_v30 = vpop.f32.mrf.mxu0  ;;  %v1053_v33 = vpop.f32.mrf.mxu1 }
 0x418   :  { %v1057_v35 = vadd.f32 %v982_v30, %v3539_v34  ;;  %v1071_v51 = vadd.f32 %v2891_v19, %v1053_v33 }
 0x419   :  { %v2107_v36 = vpop.f32.mrf.mxu1  ;;  %v984_v40 = vpop.f32.mrf.mxu0 }
 0x41a   :  { %v1778_v39 = vmul.f32 -1.442695, %v1057_v35  ;;  %v1058_v42 = vadd.f32 %v984_v40, %v3540_v41  ;;  %v3546_v35 = vld [vmem:[#allocation28_spill] sm:$0xff] }
 0x41c   :  { %2289 = vpow2.f32 %v1778_v39  ;;  %v1779_v45 = vmul.f32 -1.442695, %v1058_v42 }
 0x41e   :  { %2291 = vpow2.f32 %v1779_v45 }
 0x429   :  { %v2290_v46 = vpop.eup %2289 }
 0x42a   :  { %v1065_v47 = vadd.f32 1.0, %v2290_v46 }
 0x42b   :  { %v2292_v48 = vpop.eup %2291 }
 0x42c   :  { %2293 = vrcp.f32 %v1065_v47  ;;  %v1066_v57 = vadd.f32 1.0, %v2292_v48  ;;  %v3547_v47 = vld [vmem:[#allocation39_spill] sm:$0xff] }
 0x439   :  { %v2294_v52 = vpop.eup %2293 }
 0x43a   :  { %v1072_v53 = vmul.f32 %v2294_v52, %v1071_v51 }
 0x43c   :  { %v1073_v56 = vadd.f32 %v1072_v53, %v3541_v54 }
 0x43e   :  { %2295 = vtanh.f32 %v1073_v56 }
 0x43f   :  { %2297 = vrcp.f32 %v1066_v57 }
 0x44b   :  { %v2296_v58 = vpop.eup %2295 }
 0x44c   :  { %v1075_v59 = vsub.f32 %v3049_v38, %v2296_v58  ;;  %v2298_v60 = vpop.eup %2297  ;;  %v3247_v38 = vld [vmem:[#allocation7 + $0x18] sm:$0xff] }
 0x44d   :  { %3542 = vst [vmem:[#allocation21_spill] sm:$0xff] %v3247_v38 }
 0x44e   :  { %v1076_v62 = vmul.f32 %v2298_v60, %v1075_v59  ;;  %v3285_v59 = vld [vmem:[#allocation7 + $0x148] sm:$0xff]  ;;  %v3291_v60 = vld [vmem:[#allocation7 + $0x130] sm:$0xff] }
 0x450   :  { %v3128_v55 = vadd.f32 %v2296_v58, %v1076_v62  ;;  %v3279_v58 = vld [vmem:[#allocation7 + $0x160] sm:$0xff]  ;;  %v3297_v62 = vld [vmem:[#allocation7 + $0x118] sm:$0xff] }
 0x452   :  { %1079 = vst [vmem:[#allocation10 + $0x18] sm:$0xff] %v3128_v55  ;;  %1145 = vmatmul.mubr.f32.vlgmr.msra.gmra.mxu0 %v3128_v55  ;;  %2141 = vmatmul.mubr.f32.vlgmr.msra.gmra.mxu1 %v3128_v55 }
 0x453   :  { %1245 = vmatpush1.msra.mxu0 %v3133_v17  ;;  %2144 = vmatpush3.msra.mxu1 %v3136_v25 }
 0x454   :  { %1246 = vmatprep.subr.mxu0 %v3139_v0  ;;  %2145 = vmatprep.subr.mxu1 %v3515_v18 }
 0x455   :  { %1247 = vmatpush1.msra.mxu0 %v3143_v2  ;;  %2146 = vmatpush3.msra.mxu1 %v2694_v3  ;;  %v3163_v3 = vld [vmem:[#allocation7 + $0x110] sm:$0xff] }
 0x456   :  { %1248 = vmatprep.subr.mxu0 %v3147_v20  ;;  %2147 = vmatprep.subr.mxu1 %v3515_v18 }
 0x457   :  { %1249 = vmatpush1.msra.mxu0 %v3151_v21  ;;  %2148 = vmatpush3.msra.mxu1 %v2705_v5  ;;  %v3171_v5 = vld [vmem:[#allocation7 + $0xf8] sm:$0xff] }
 0x458   :  { %1250 = vmatprep.subr.mxu0 %v3155_v49  ;;  %2149 = vmatprep.subr.mxu1 %v3515_v18 }
 0x459   :  { %1251 = vmatpush1.msra.mxu0 %v3159_v26  ;;  %2150 = vmatpush3.msra.mxu1 %v2711_v6  ;;  %v3179_v6 = vld [vmem:[#allocation7 + $0xe0] sm:$0xff] }
 0x45a   :  { %1252 = vmatprep.subr.mxu0 %v3163_v3  ;;  %2151 = vmatprep.subr.mxu1 %v3515_v18 }
 0x45b   :  { %1253 = vmatpush1.msra.mxu0 %v3167_v50  ;;  %2152 = vmatpush3.msra.mxu1 %v2717_v7  ;;  %v3187_v7 = vld [vmem:[#allocation7 + $0xc8] sm:$0xff] }
 0x45c   :  { %1254 = vmatprep.subr.mxu0 %v3171_v5  ;;  %2153 = vmatprep.subr.mxu1 %v3515_v18 }
 0x45d   :  { %1255 = vmatpush1.msra.mxu0 %v3175_v44  ;;  %2154 = vmatpush3.msra.mxu1 %v2725_v8  ;;  %v3195_v8 = vld [vmem:[#allocation7 + $0xb0] sm:$0xff] }
 0x45e   :  { %1256 = vmatprep.subr.mxu0 %v3179_v6  ;;  %2155 = vmatprep.subr.mxu1 %v3515_v18 }
 0x45f   :  { %1257 = vmatpush1.msra.mxu0 %v3183_v32  ;;  %2156 = vmatpush3.msra.mxu1 %v2731_v9  ;;  %v3203_v9 = vld [vmem:[#allocation7 + $0x98] sm:$0xff] }
 0x460   :  { %1258 = vmatprep.subr.mxu0 %v3187_v7  ;;  %2157 = vmatprep.subr.mxu1 %v3515_v18 }
 0x461   :  { %1259 = vmatpush1.msra.mxu0 %v3191_v31  ;;  %2158 = vmatpush3.msra.mxu1 %v2738_v10  ;;  %v3211_v10 = vld [vmem:[#allocation7 + $0x80] sm:$0xff] }
 0x462   :  { %1260 = vmatprep.subr.mxu0 %v3195_v8  ;;  %2159 = vmatprep.subr.mxu1 %v3515_v18 }
 0x463   :  { %1261 = vmatpush1.msra.mxu0 %v3199_v43  ;;  %2160 = vmatpush3.msra.mxu1 %v2744_v11  ;;  %v3219_v11 = vld [vmem:[#allocation7 + $0x68] sm:$0xff] }
 0x464   :  { %1262 = vmatprep.subr.mxu0 %v3203_v9  ;;  %2161 = vmatprep.subr.mxu1 %v3515_v18 }
 0x465   :  { %1263 = vmatpush1.msra.mxu0 %v3207_v4  ;;  %2162 = vmatpush3.msra.mxu1 %v2751_v12  ;;  %v3227_v12 = vld [vmem:[#allocation7 + $0x50] sm:$0xff] }
 0x466   :  { %1264 = vmatprep.subr.mxu0 %v3211_v10  ;;  %2163 = vmatprep.subr.mxu1 %v3515_v18 }
 0x467   :  { %1265 = vmatpush1.msra.mxu0 %v3215_v61  ;;  %2164 = vmatpush3.msra.mxu1 %v2757_v13  ;;  %v3235_v13 = vld [vmem:[#allocation7 + $0x38] sm:$0xff] }
 0x468   :  { %1266 = vmatprep.subr.mxu0 %v3219_v11  ;;  %2165 = vmatprep.subr.mxu1 %v3515_v18 }
 0x469   :  { %1267 = vmatpush1.msra.mxu0 %v3223_v1  ;;  %2166 = vmatpush3.msra.mxu1 %v2763_v14  ;;  %v3243_v14 = vld [vmem:[#allocation7 + $0x20] sm:$0xff] }
 0x46a   :  { %1268 = vmatprep.subr.mxu0 %v3227_v12  ;;  %2167 = vmatprep.subr.mxu1 %v3515_v18 }
 0x46b   :  { %1269 = vmatpush1.msra.mxu0 %v3231_v63  ;;  %2168 = vmatpush3.msra.mxu1 %v2769_v15  ;;  %v3251_v15 = vld [vmem:[#allocation7 + $0x8] sm:$0xff] }
 0x46c   :  { %1270 = vmatprep.subr.mxu0 %v3235_v13  ;;  %2169 = vmatprep.subr.mxu1 %v3515_v18  ;;  %3543 = vst [vmem:[#allocation22_spill] sm:$0xff] %v3251_v15 }
 0x46d   :  { %1271 = vmatpush1.msra.mxu0 %v3239_v37  ;;  %2170 = vmatpush3.msra.mxu1 %v2775_v16 }
 0x46e   :  { %1272 = vmatprep.subr.mxu0 %v3243_v14  ;;  %2171 = vmatprep.subr.mxu1 %v3515_v18 }
 0x46f   :  { %1273 = vmatpush1.msra.mxu0 %v3247_v38  ;;  %2172 = vmatpush3.msra.mxu1 %v3535_v23 }
 0x470   :  { %1274 = vmatprep.subr.mxu0 %v3251_v15  ;;  %2173 = vmatprep.subr.mxu1 %v3515_v18 }
 0x471   :  { %1275 = vmatpush1.msra.mxu0 %v3255_v22  ;;  %1308 = vmatprep.mubr.f32.mxu0 %v3515_v18 }
 0x472   :  { %2174 = vmatpush3.msra.mxu1 %v3538_v28  ;;  %2175 = vmatprep.mubr.msk.f32.mxu1 %vm2505_vm1, %v3515_v18 }
 0x473   :  { %1408 = vmatprep.subr.mxu0 %v3119_v29  ;;  %2178 = vmatprep.subr.mxu1 %v3515_v18 }
 0x512   :  { %v1146_v16 = vpop.f32.mrf.mxu0  ;;  %v1217_v23 = vpop.f32.mrf.mxu1 }
 0x513   :  { %v1221_v27 = vadd.f32 %v1146_v16, %v3545_v24  ;;  %v1235_v42 = vadd.f32 %v2891_v19, %v1217_v23  ;;  %v3309_v16 = vld [vmem:[#allocation7 + $0xe8] sm:$0xff]  ;;  %v3315_v23 = vld [vmem:[#allocation7 + $0xd0] sm:$0xff]  ;;  %v3321_v24 = vld [vmem:[#allocation7 + $0xb8] sm:$0xff] }
 0x514   :  { %v2142_v30 = vpop.f32.mrf.mxu1  ;;  %v1148_v34 = vpop.f32.mrf.mxu0 }
 0x515   :  { %v1780_v33 = vmul.f32 -1.442695, %v1221_v27  ;;  %v1222_v36 = vadd.f32 %v1148_v34, %v3546_v35  ;;  %v3327_v27 = vld [vmem:[#allocation7 + $0xa0] sm:$0xff]  ;;  %v3333_v30 = vld [vmem:[#allocation7 + $0x88] sm:$0xff]  ;;  %v3345_v34 = vld [vmem:[#allocation7 + $0x58] sm:$0xff] }
 0x516   :  { %v3351_v35 = vld [vmem:[#allocation7 + $0x40] sm:$0xff] }
 0x517   :  { %2299 = vpow2.f32 %v1780_v33  ;;  %v1781_v39 = vmul.f32 -1.442695, %v1222_v36  ;;  %v3339_v33 = vld [vmem:[#allocation7 + $0x70] sm:$0xff]  ;;  %v3357_v36 = vld [vmem:[#allocation7 + $0x28] sm:$0xff] }
 0x518   :  { %3548 = vst [vmem:[#allocation15_spill] sm:$0xff] %v3357_v36 }
 0x519   :  { %2301 = vpow2.f32 %v1781_v39  ;;  %v3364_v39 = vld [vmem:[#allocation7 + $0x10] sm:$0xff] }
 0x51a   :  { %3549 = vst [vmem:[#allocation23_spill] sm:$0xff] %v3364_v39 }
 0x524   :  { %v2300_v40 = vpop.eup %2299 }
 0x525   :  { %v1229_v28 = vadd.f32 1.0, %v2300_v40 }
 0x526   :  { %v2302_v41 = vpop.eup %2301 }
 0x527   :  { %2303 = vrcp.f32 %v1229_v28  ;;  %v1230_v51 = vadd.f32 1.0, %v2302_v41  ;;  %v3550_v41 = vld [vmem:[#allocation29_spill] sm:$0xff] }
 0x534   :  { %v2304_v45 = vpop.eup %2303 }
 0x535   :  { %v1236_v46 = vmul.f32 %v2304_v45, %v1235_v42 }
 0x537   :  { %v1237_v48 = vadd.f32 %v1236_v46, %v3547_v47 }
 0x539   :  { %2305 = vtanh.f32 %v1237_v48  ;;  %v3551_v48 = vld [vmem:[#allocation30_spill] sm:$0xff] }
 0x53a   :  { %2307 = vrcp.f32 %v1230_v51 }
 0x546   :  { %v2306_v52 = vpop.eup %2305 }
 0x547   :  { %v1239_v53 = vsub.f32 %v3128_v55, %v2306_v52  ;;  %v2308_v54 = vpop.eup %2307  ;;  %v3303_v55 = vld [vmem:[#allocation7 + $0x100] sm:$0xff] }
 0x549   :  { %v1240_v56 = vmul.f32 %v2308_v54, %v1239_v53 }
 0x54b   :  { %v3269_v57 = vadd.f32 %v2306_v52, %v1240_v56 }
 0x54d   :  { %1243 = vst [vmem:[#allocation10 + $0x20] sm:$0xff] %v3269_v57  ;;  %1309 = vmatmul.mubr.f32.vlgmr.msra.gmra.mxu0 %v3269_v57  ;;  %2176 = vmatmul.mubr.f32.vlgmr.msra.gmra.mxu1 %v3269_v57 }
 0x54e   :  { %1409 = vmatpush1.msra.mxu0 %v3133_v17  ;;  %2179 = vmatpush3.msra.mxu1 %v3136_v25 }
 0x54f   :  { %1410 = vmatprep.subr.mxu0 %v3139_v0  ;;  %2180 = vmatprep.subr.mxu1 %v3515_v18 }
 0x550   :  { %1411 = vmatpush1.msra.mxu0 %v3143_v2  ;;  %2181 = vmatpush3.msra.mxu1 %v3279_v58 }
 0x551   :  { %1412 = vmatprep.subr.mxu0 %v3147_v20  ;;  %2182 = vmatprep.subr.mxu1 %v3515_v18 }
 0x552   :  { %1413 = vmatpush1.msra.mxu0 %v3151_v21  ;;  %2183 = vmatpush3.msra.mxu1 %v3285_v59 }
 0x553   :  { %1414 = vmatprep.subr.mxu0 %v3155_v49  ;;  %2184 = vmatprep.subr.mxu1 %v3515_v18 }
 0x554   :  { %1415 = vmatpush1.msra.mxu0 %v3159_v26  ;;  %2185 = vmatpush3.msra.mxu1 %v3291_v60 }
 0x555   :  { %1416 = vmatprep.subr.mxu0 %v3163_v3  ;;  %2186 = vmatprep.subr.mxu1 %v3515_v18 }
 0x556   :  { %1417 = vmatpush1.msra.mxu0 %v3167_v50  ;;  %2187 = vmatpush3.msra.mxu1 %v3297_v62 }
 0x557   :  { %1418 = vmatprep.subr.mxu0 %v3171_v5  ;;  %2188 = vmatprep.subr.mxu1 %v3515_v18 }
 0x558   :  { %1419 = vmatpush1.msra.mxu0 %v3175_v44  ;;  %2189 = vmatpush3.msra.mxu1 %v3303_v55 }
 0x559   :  { %1420 = vmatprep.subr.mxu0 %v3179_v6  ;;  %2190 = vmatprep.subr.mxu1 %v3515_v18 }
 0x55a   :  { %1421 = vmatpush1.msra.mxu0 %v3183_v32  ;;  %2191 = vmatpush3.msra.mxu1 %v3309_v16 }
 0x55b   :  { %1422 = vmatprep.subr.mxu0 %v3187_v7  ;;  %2192 = vmatprep.subr.mxu1 %v3515_v18 }
 0x55c   :  { %1423 = vmatpush1.msra.mxu0 %v3191_v31  ;;  %2193 = vmatpush3.msra.mxu1 %v3315_v23 }
 0x55d   :  { %1424 = vmatprep.subr.mxu0 %v3195_v8  ;;  %2194 = vmatprep.subr.mxu1 %v3515_v18 }
 0x55e   :  { %1425 = vmatpush1.msra.mxu0 %v3199_v43  ;;  %2195 = vmatpush3.msra.mxu1 %v3321_v24 }
 0x55f   :  { %1426 = vmatprep.subr.mxu0 %v3203_v9  ;;  %2196 = vmatprep.subr.mxu1 %v3515_v18 }
 0x560   :  { %1427 = vmatpush1.msra.mxu0 %v3207_v4  ;;  %2197 = vmatpush3.msra.mxu1 %v3327_v27 }
 0x561   :  { %1428 = vmatprep.subr.mxu0 %v3211_v10  ;;  %2198 = vmatprep.subr.mxu1 %v3515_v18 }
 0x562   :  { %1429 = vmatpush1.msra.mxu0 %v3215_v61  ;;  %2199 = vmatpush3.msra.mxu1 %v3333_v30 }
 0x563   :  { %1430 = vmatprep.subr.mxu0 %v3219_v11  ;;  %2200 = vmatprep.subr.mxu1 %v3515_v18 }
 0x564   :  { %1431 = vmatpush1.msra.mxu0 %v3223_v1  ;;  %2201 = vmatpush3.msra.mxu1 %v3339_v33 }
 0x565   :  { %1432 = vmatprep.subr.mxu0 %v3227_v12  ;;  %2202 = vmatprep.subr.mxu1 %v3515_v18 }
 0x566   :  { %1433 = vmatpush1.msra.mxu0 %v3231_v63  ;;  %2203 = vmatpush3.msra.mxu1 %v3345_v34 }
 0x567   :  { %1434 = vmatprep.subr.mxu0 %v3235_v13  ;;  %2204 = vmatprep.subr.mxu1 %v3515_v18 }
 0x568   :  { %1435 = vmatpush1.msra.mxu0 %v3239_v37  ;;  %2205 = vmatpush3.msra.mxu1 %v3351_v35 }
 0x569   :  { %1436 = vmatprep.subr.mxu0 %v3243_v14  ;;  %2206 = vmatprep.subr.mxu1 %v3515_v18 }
 0x56a   :  { %1437 = vmatpush1.msra.mxu0 %v3247_v38  ;;  %2207 = vmatpush3.msra.mxu1 %v3357_v36 }
 0x56b   :  { %1438 = vmatprep.subr.mxu0 %v3251_v15  ;;  %2208 = vmatprep.subr.mxu1 %v3515_v18  ;;  %v3552_v15 = vld [vmem:[#allocation38_spill] sm:$0xff] }
 0x56c   :  { %1439 = vmatpush1.msra.mxu0 %v3255_v22  ;;  %1472 = vmatprep.mubr.f32.mxu0 %v3515_v18 }
 0x56d   :  { %2209 = vmatpush3.msra.mxu1 %v3364_v39  ;;  %2210 = vmatprep.mubr.msk.f32.mxu1 %vm2505_vm1, %v3515_v18 }
 0x56e   :  { %1572 = vmatprep.subr.mxu0 %v3119_v29  ;;  %2213 = vmatprep.subr.mxu1 %v3515_v18 }
 0x60d   :  { %v1310_v40 = vpop.f32.mrf.mxu0  ;;  %v1381_v28 = vpop.f32.mrf.mxu1 }
 0x60e   :  { %v1385_v42 = vadd.f32 %v1310_v40, %v3550_v41  ;;  %v1399_v29 = vadd.f32 %v2891_v19, %v1381_v28  ;;  %v3553_v19 = vld [vmem:[#allocation21_spill] sm:$0xff] }
 0x60f   :  { %v2177_v45 = vpop.f32.mrf.mxu1  ;;  %v1312_v47 = vpop.f32.mrf.mxu0 }
 0x610   :  { %v1782_v46 = vmul.f32 -1.442695, %v1385_v42  ;;  %v1386_v51 = vadd.f32 %v1312_v47, %v3551_v48 }
 0x612   :  { %2309 = vpow2.f32 %v1782_v46  ;;  %v1783_v52 = vmul.f32 -1.442695, %v1386_v51 }
 0x614   :  { %2311 = vpow2.f32 %v1783_v52 }
 0x61f   :  { %v2310_v53 = vpop.eup %2309 }
 0x620   :  { %v1393_v54 = vadd.f32 1.0, %v2310_v53 }
 0x621   :  { %v2312_v56 = vpop.eup %2311 }
 0x622   :  { %2313 = vrcp.f32 %v1393_v54  ;;  %v1394_v38 = vadd.f32 1.0, %v2312_v56 }
 0x62f   :  { %v2314_v39 = vpop.eup %2313 }
 0x630   :  { %v1400_v22 = vmul.f32 %v2314_v39, %v1399_v29 }
 0x632   :  { %v1401_v36 = vadd.f32 %v1400_v22, %v3552_v15  ;;  %v3561_v15 = vld [vmem:[#allocation34_spill] sm:$0xff] }
 0x634   :  { %2315 = vtanh.f32 %v1401_v36 }
 0x635   :  { %2317 = vrcp.f32 %v1394_v38 }
 0x641   :  { %v2316_v40 = vpop.eup %2315 }
 0x642   :  { %v1403_v41 = vsub.f32 %v3269_v57, %v2316_v40  ;;  %v2318_v42 = vpop.eup %2317 }
 0x644   :  { %v1404_v45 = vmul.f32 %v2318_v42, %v1403_v41 }
 0x646   :  { %v3376_v46 = vadd.f32 %v2316_v40, %v1404_v45 }
 0x648   :  { %1407 = vst [vmem:[#allocation10 + $0x28] sm:$0xff] %v3376_v46  ;;  %1473 = vmatmul.mubr.f32.vlgmr.msra.gmra.mxu0 %v3376_v46  ;;  %2211 = vmatmul.mubr.f32.vlgmr.msra.gmra.mxu1 %v3376_v46 }
 0x649   :  { %1573 = vmatpush1.msra.mxu0 %v3133_v17  ;;  %2214 = vmatpush3.msra.mxu1 %v3136_v25  ;;  %v3554_v17 = vld [vmem:[#allocation15_spill] sm:$0xff]  ;;  %v3555_v25 = vld [vmem:[#allocation22_spill] sm:$0xff] }
 0x64a   :  { %1574 = vmatprep.subr.mxu0 %v3139_v0  ;;  %2215 = vmatprep.subr.mxu1 %v3515_v18  ;;  %v3556_v0 = vld [vmem:[#allocation33_spill] sm:$0xff] }
 0x64b   :  { %1575 = vmatpush1.msra.mxu0 %v3143_v2  ;;  %2216 = vmatpush3.msra.mxu1 %v3279_v58  ;;  %v3557_v2 = vld [vmem:[#allocation23_spill] sm:$0xff] }
 0x64c   :  { %1576 = vmatprep.subr.mxu0 %v3147_v20  ;;  %2217 = vmatprep.subr.mxu1 %v3515_v18 }
 0x64d   :  { %1577 = vmatpush1.msra.mxu0 %v3151_v21  ;;  %2218 = vmatpush3.msra.mxu1 %v3285_v59 }
 0x64e   :  { %1578 = vmatprep.subr.mxu0 %v3155_v49  ;;  %2219 = vmatprep.subr.mxu1 %v3515_v18  ;;  %v3558_v49 = vld [vmem:[#allocation31_spill] sm:$0xff] }
 0x64f   :  { %1579 = vmatpush1.msra.mxu0 %v3159_v26  ;;  %2220 = vmatpush3.msra.mxu1 %v3291_v60  ;;  %v3562_v60 = vld [vmem:[#allocation35_spill] sm:$0xff] }
 0x650   :  { %1580 = vmatprep.subr.mxu0 %v3163_v3  ;;  %2221 = vmatprep.subr.mxu1 %v3515_v18 }
 0x651   :  { %1581 = vmatpush1.msra.mxu0 %v3167_v50  ;;  %2222 = vmatpush3.msra.mxu1 %v3297_v62 }
 0x652   :  { %1582 = vmatprep.subr.mxu0 %v3171_v5  ;;  %2223 = vmatprep.subr.mxu1 %v3515_v18 }
 0x653   :  { %1583 = vmatpush1.msra.mxu0 %v3175_v44  ;;  %2224 = vmatpush3.msra.mxu1 %v3303_v55  ;;  %v3559_v44 = vld [vmem:[#allocation32_spill] sm:$0xff] }
 0x654   :  { %1584 = vmatprep.subr.mxu0 %v3179_v6  ;;  %2225 = vmatprep.subr.mxu1 %v3515_v18 }
 0x655   :  { %1585 = vmatpush1.msra.mxu0 %v3183_v32  ;;  %2226 = vmatpush3.msra.mxu1 %v3309_v16 }
 0x656   :  { %1586 = vmatprep.subr.mxu0 %v3187_v7  ;;  %2227 = vmatprep.subr.mxu1 %v3515_v18 }
 0x657   :  { %1587 = vmatpush1.msra.mxu0 %v3191_v31  ;;  %2228 = vmatpush3.msra.mxu1 %v3315_v23 }
 0x658   :  { %1588 = vmatprep.subr.mxu0 %v3195_v8  ;;  %2229 = vmatprep.subr.mxu1 %v3515_v18 }
 0x659   :  { %1589 = vmatpush1.msra.mxu0 %v3199_v43  ;;  %2230 = vmatpush3.msra.mxu1 %v3321_v24 }
 0x65a   :  { %1590 = vmatprep.subr.mxu0 %v3203_v9  ;;  %2231 = vmatprep.subr.mxu1 %v3515_v18 }
 0x65b   :  { %1591 = vmatpush1.msra.mxu0 %v3207_v4  ;;  %2232 = vmatpush3.msra.mxu1 %v3327_v27 }
 0x65c   :  { %1592 = vmatprep.subr.mxu0 %v3211_v10  ;;  %2233 = vmatprep.subr.mxu1 %v3515_v18  ;;  %v3560_v10 = vld [vmem:[#allocation41_spill] sm:$0xff] }
 0x65d   :  { %1593 = vmatpush1.msra.mxu0 %v3215_v61  ;;  %2234 = vmatpush3.msra.mxu1 %v3333_v30 }
 0x65e   :  { %1594 = vmatprep.subr.mxu0 %v3219_v11  ;;  %2235 = vmatprep.subr.mxu1 %v3515_v18 }
 0x65f   :  { %1595 = vmatpush1.msra.mxu0 %v3223_v1  ;;  %2236 = vmatpush3.msra.mxu1 %v3339_v33 }
 0x660   :  { %1596 = vmatprep.subr.mxu0 %v3227_v12  ;;  %2237 = vmatprep.subr.mxu1 %v3515_v18 }
 0x661   :  { %1597 = vmatpush1.msra.mxu0 %v3231_v63  ;;  %2238 = vmatpush3.msra.mxu1 %v3345_v34  ;;  %v3563_v34 = vld [vmem:[#allocation40_spill] sm:$0xff] }
 0x662   :  { %1598 = vmatprep.subr.mxu0 %v3235_v13  ;;  %2239 = vmatprep.subr.mxu1 %v3515_v18 }
 0x663   :  { %1599 = vmatpush1.msra.mxu0 %v3239_v37  ;;  %2240 = vmatpush3.msra.mxu1 %v3351_v35 }
 0x664   :  { %1600 = vmatprep.subr.mxu0 %v3243_v14  ;;  %2241 = vmatprep.subr.mxu1 %v3515_v18 }
 0x665   :  { %1601 = vmatpush1.msra.mxu0 %v3553_v19  ;;  %2242 = vmatpush3.msra.mxu1 %v3554_v17 }
 0x666   :  { %1602 = vmatprep.subr.mxu0 %v3555_v25  ;;  %2243 = vmatprep.subr.mxu1 %v3515_v18 }
 0x667   :  { %1603 = vmatpush1.msra.mxu0 %v3556_v0  ;;  %1636 = vmatprep.mubr.f32.mxu0 %v3515_v18 }
 0x668   :  { %2244 = vmatpush3.msra.mxu1 %v3557_v2  ;;  %2245 = vmatprep.mubr.msk.f32.mxu1 %vm2505_vm1, %v3515_v18  ;;  %v2387_v18 = vld [vmem:[%s3466_s4] ss:$0 sm:$0xff]  ;;  %s2506_s4 = smov [#allocation10]  }
 0x669   :  { %s1741_s23 = sshll.u32 %s2506_s4, 4  ;;  %s1742_s23 = int_to_ptr.vmem [resolvable:$true] %s1741_s23 }
 0x66a   :  { %s2468_s24 = scalar_lea.vmem %s1742_s23, 1024  ;;  %p2473_p7 = scmp.lt.s32.totalorder %s1742_s23, %s1742_s23 }
 0x66b   :  { %p2469_p6 = scmp.ne.s32.totalorder %s1742_s23, %s2468_s24  ;;  %p2474_p8 = scmp.lt.s32.totalorder %s2468_s24, %s2468_s24 }
 0x66d   :  { %p2475_p9 = por %p2474_p8, %p2473_p7 }
 0x66f   :  { %p2476_p10 = pnand %p2475_p9, %p2469_p6 }
 0x708   :  { %v1474_v20 = vpop.f32.mrf.mxu0  ;;  %v1545_v21 = vpop.f32.mrf.mxu1 }
 0x709   :  { %v1549_v26 = vadd.f32 %v1474_v20, %v3558_v49  ;;  %v1563_v43 = vadd.f32 %v2387_v18, %v1545_v21 }
 0x70a   :  { %v2212_v3 = vpop.f32.mrf.mxu1  ;;  %v1476_v5 = vpop.f32.mrf.mxu0 }
 0x70b   :  { %v1784_v50 = vmul.f32 -1.442695, %v1549_v26  ;;  %v1550_v6 = vadd.f32 %v1476_v5, %v3559_v44 }
 0x70d   :  { %2319 = vpow2.f32 %v1784_v50  ;;  %v1785_v32 = vmul.f32 -1.442695, %v1550_v6 }
 0x70f   :  { %2321 = vpow2.f32 %v1785_v32 }
 0x71a   :  { %v2320_v7 = vpop.eup %2319 }
 0x71b   :  { %v1557_v31 = vadd.f32 1.0, %v2320_v7 }
 0x71c   :  { %v2322_v8 = vpop.eup %2321 }
 0x71d   :  { %2323 = vrcp.f32 %v1557_v31  ;;  %v1558_v11 = vadd.f32 1.0, %v2322_v8 }
 0x72a   :  { %v2324_v9 = vpop.eup %2323 }
 0x72b   :  { %v1564_v4 = vmul.f32 %v2324_v9, %v1563_v43 }
 0x72d   :  { %v1565_v61 = vadd.f32 %v1564_v4, %v3560_v10 }
 0x72f   :  { %2325 = vtanh.f32 %v1565_v61 }
 0x730   :  { %2327 = vrcp.f32 %v1558_v11 }
 0x73c   :  { %v2326_v1 = vpop.eup %2325 }
 0x73d   :  { %v1567_v12 = vsub.f32 %v3376_v46, %v2326_v1  ;;  %v2328_v63 = vpop.eup %2327 }
 0x73f   :  { %v1568_v13 = vmul.f32 %v2328_v63, %v1567_v12 }
 0x741   :  { %v1569_v37 = vadd.f32 %v2326_v1, %v1568_v13 }
 0x743   :  { %1571 = vst [vmem:[#allocation10 + $0x30] sm:$0xff] %v1569_v37  ;;  %1637 = vmatmul.mubr.f32.vlgmr.msra.gmra.mxu0 %v1569_v37  ;;  %2246 = vmatmul.mubr.f32.vlgmr.msra.gmra.mxu1 %v1569_v37 }
 0x803   :  { %v1638_v14 = vpop.f32.mrf.mxu0  ;;  %v1709_v38 = vpop.f32.mrf.mxu1 }
 0x804   :  { %v1713_v22 = vadd.f32 %v1638_v14, %v3561_v15  ;;  %v1727_v27 = vadd.f32 %v2387_v18, %v1709_v38 }
 0x805   :  { %v2247_v57 = vpop.f32.mrf.mxu1  ;;  %v1640_v59 = vpop.f32.mrf.mxu0 }
 0x806   :  { %v1786_v58 = vmul.f32 -1.442695, %v1713_v22  ;;  %v1714_v62 = vadd.f32 %v1640_v59, %v3562_v60 }
 0x808   :  { %2329 = vpow2.f32 %v1786_v58  ;;  %v1787_v55 = vmul.f32 -1.442695, %v1714_v62 }
 0x80a   :  { %2331 = vpow2.f32 %v1787_v55 }
 0x815   :  { %v2330_v16 = vpop.eup %2329 }
 0x816   :  { %v1721_v23 = vadd.f32 1.0, %v2330_v16 }
 0x817   :  { %v2332_v24 = vpop.eup %2331 }
 0x818   :  { %2333 = vrcp.f32 %v1721_v23  ;;  %v1722_v36 = vadd.f32 1.0, %v2332_v24 }
 0x825   :  { %v2334_v30 = vpop.eup %2333 }
 0x826   :  { %v1728_v33 = vmul.f32 %v2334_v30, %v1727_v27 }
 0x828   :  { %v1729_v35 = vadd.f32 %v1728_v33, %v3563_v34 }
 0x82a   :  { %2335 = vtanh.f32 %v1729_v35 }
 0x82b   :  { %2337 = vrcp.f32 %v1722_v36 }
 0x837   :  { %v2336_v39 = vpop.eup %2335 }
 0x838   :  { %v1731_v28 = vsub.f32 %v1569_v37, %v2336_v39  ;;  %v2338_v47 = vpop.eup %2337 }
 0x83a   :  { %v1732_v48 = vmul.f32 %v2338_v47, %v1731_v28 }
 0x83c   :  { %v1733_v51 = vadd.f32 %v2336_v39, %v1732_v48 }
 0x83e   :  { %1735 = vst [vmem:[#allocation10 + $0x38] sm:$0xff] %v1733_v51 }
 0x83f   :  { %2479 = shalt.err (!%p2476_p10)
}
 0x840   :  { %1747 = dma.vmem_to_hbm [thread:$0]  %s1742_s23, 1024, %s3468_s6, [#allocation4], %s2500_s7, %s2500_s7, %s2501_s8  }
 0x841   :  { %2494 = dma.done.wait [#allocation4], 1024  }
 0x842   :  { %2495 = vsyncadd [#allocation4], 4294966272 }
 0x843   :  { %1751 = vsyncpa [#allocation3], 1 }
 0x844   :  { %1752 = vsyncpa [#allocation6], 1 }
 0x845   :  { %1753 = vsyncpa [#allocation9], 1 }
 0x846   :  { %1754 = vsyncpa [#allocation4], 1 }

</bundles_post_ra>
